<compile_context>
chip_gen: v7x
topology: tpu7x:2x2x1
jax: 0.10.0
libtpu: 0.0.40
codegen_flags: <defaults>
</compile_context>

<pallas_src>
import functools
import math

import jax
import jax.numpy as jnp
from jax.experimental import pallas as pl
from jax.experimental.pallas import tpu as pltpu


# ----------------------------------------------------------------------------
# In-kernel helpers (pure jnp, lower to VPU/EUP ops)
# ----------------------------------------------------------------------------

_SQRT_2 = math.sqrt(2.0)


def _erf(x):
    # Abramowitz & Stegun 7.1.26 polynomial, max abs error ~1.5e-7.
    # Uses only compare/select/mul/add/exp -> lowers cleanly on TPU.
    p = 0.3275911
    a1, a2, a3, a4, a5 = (0.254829592, -0.284496736, 1.421413741,
                          -1.453152027, 1.061405429)
    sign = jnp.where(x >= 0.0, 1.0, -1.0)
    ax = jnp.abs(x)
    t = 1.0 / (1.0 + p * ax)
    poly = t * (a1 + t * (a2 + t * (a3 + t * (a4 + t * a5))))
    return sign * (1.0 - poly * jnp.exp(-ax * ax))


def _gelu_exact(x):
    # Matches PyTorch nn.GELU default (exact erf form).
    return 0.5 * x * (1.0 + _erf(x / _SQRT_2))


def _layernorm(z, g, b, eps=1e-5):
    mu = jnp.mean(z, axis=-1, keepdims=True)
    var = jnp.mean((z - mu) ** 2, axis=-1, keepdims=True)
    return (z - mu) * jax.lax.rsqrt(var + eps) * g + b


# ----------------------------------------------------------------------------
# Fused whole-model Pallas kernel
# ----------------------------------------------------------------------------

def fused_roberta_kernel(idx_ref,            # SMEM (M,) int32 masked row ids
                         bias_ref,           # (1, S)  f32 key-side mask bias
                         h_ref,              # (S, H)  f32 embedded input
                         wqkv_ref, bqkv_ref,  # (L,H,3H) bf16 / (L,1,3H) f32
                         wo_ref, bo_ref,      # (L,H,H)  f32  / (L,1,H)  f32
                         ln1g_ref, ln1b_ref,  # (L,1,H) f32
                         w1_ref, b1_ref,      # (L,H,F) bf16 / (L,1,F) f32
                         w2_ref, b2_ref,      # (L,F,H) bf16 / (L,1,H) f32
                         ln2g_ref, ln2b_ref,  # (L,1,H) f32
                         ow_ref, ob_ref,      # (H,V)   bf16 / (1,V)   f32
                         probs_ref,           # out (S, V) f32
                         mlog_ref,            # out (M, V) f32
                         logits_sc,           # VMEM scratch (S, V) f32
                         *, num_layers, num_heads, head_dim, num_masked):
    f32 = jnp.float32
    bf16 = jnp.bfloat16
    H = num_heads * head_dim
    scale = 1.0 / math.sqrt(head_dim)

    h = h_ref[...]                              # (S, H) f32
    S = h.shape[0]
    mask_bias = bias_ref[...]                   # (1, S) f32

    for l in range(num_layers):                 # static unroll (L = 2)
        # ---- QKV projection: bf16 operands, f32 accumulation ----
        qkv = jnp.dot(h.astype(bf16), wqkv_ref[l],
                      preferred_element_type=f32) + bqkv_ref[l]      # (S, 3H)

        # ---- multi-head attention: heads are lane slices of qkv ----
        wo = wo_ref[l]                          # (H, H) f32
        attn = jnp.zeros((S, H), f32)
        for hd in range(num_heads):             # static unroll (nh = 4)
            lo = hd * head_dim
            q = qkv[:, lo:lo + head_dim].astype(bf16)                # (S, dh)
            k = qkv[:, H + lo:H + lo + head_dim].astype(bf16)        # (S, dh)
            v = qkv[:, 2 * H + lo:2 * H + lo + head_dim].astype(bf16)
            # scores: contract head_dim of q and k (no explicit transpose)
            s = jax.lax.dot_general(
                q, k, (((1,), (1,)), ((), ())),
                preferred_element_type=f32) * scale + mask_bias      # (S, S)
            m = jnp.max(s, axis=-1, keepdims=True)
            p = jnp.exp(s - m)
            p = p * pl.reciprocal(jnp.sum(p, axis=-1, keepdims=True),
                                  approx=True)
            ctx_h = jnp.dot(p.astype(bf16), v,
                            preferred_element_type=f32)              # (S, dh)
            # fold head straight through its slice of W_o (keeps everything
            # lane-dense; avoids concat / (nh,S,dh) layouts entirely)
            wo_h = wo[lo:lo + head_dim, :].astype(bf16)              # (dh, H)
            attn = attn + jnp.dot(ctx_h.astype(bf16), wo_h,
                                  preferred_element_type=f32)        # (S, H)
        attn = attn + bo_ref[l]
        h = _layernorm(h + attn, ln1g_ref[l], ln1b_ref[l])

        # ---- GELU feed-forward ----
        ff = jnp.dot(h.astype(bf16), w1_ref[l],
                     preferred_element_type=f32) + b1_ref[l]         # (S, F)
        ff = _gelu_exact(ff)
        ff = jnp.dot(ff.astype(bf16), w2_ref[l],
                     preferred_element_type=f32) + b2_ref[l]         # (S, H)
        h = _layernorm(h + ff, ln2g_ref[l], ln2b_ref[l])

    # ---- vocab projection + softmax ----
    logits = jnp.dot(h.astype(bf16), ow_ref[...],
                     preferred_element_type=f32) + ob_ref[...]       # (S, V)
    logits_sc[...] = logits
    m = jnp.max(logits, axis=-1, keepdims=True)
    e = jnp.exp(logits - m)
    probs_ref[...] = e / jnp.sum(e, axis=-1, keepdims=True)  # exact division

    # ---- in-kernel gather of masked rows (no HBM round-trip of logits) ----
    for mi in range(num_masked):                # static unroll (M small)
        row = logits_sc[pl.ds(idx_ref[mi], 1), :]                    # (1, V)
        mlog_ref[pl.ds(mi, 1), :] = row


# ----------------------------------------------------------------------------
# Pallas wrapper
# ----------------------------------------------------------------------------

def mlm_roberta_pallas(params, h0, attn_bias, masked_idx, cfg):
    S, H, V = cfg.seq_len, cfg.hidden, cfg.vocab_size
    M = int(masked_idx.shape[0])

    kernel = functools.partial(
        fused_roberta_kernel,
        num_layers=cfg.num_layers,
        num_heads=cfg.num_heads,
        head_dim=H // cfg.num_heads,
        num_masked=M,
    )

    vmem = pl.BlockSpec(memory_space=pltpu.MemorySpace.VMEM)
    smem = pl.BlockSpec(memory_space=pltpu.MemorySpace.SMEM)

    probs, masked_logits = pl.pallas_call(
        kernel,
        out_shape=(
            jax.ShapeDtypeStruct((S, V), jnp.float32),   # probabilities
            jax.ShapeDtypeStruct((M, V), jnp.float32),   # masked_logits
        ),
        in_specs=[smem] + [vmem] * 16,
        out_specs=(vmem, vmem),
        scratch_shapes=[pltpu.VMEM((S, V), jnp.float32)],
    )(masked_idx, attn_bias, h0,
      params["wqkv"], params["bqkv"], params["wo"], params["bo"],
      params["ln1_g"], params["ln1_b"],
      params["w1"], params["b1"], params["w2"], params["b2"],
      params["ln2_g"], params["ln2_b"],
      params["out_w"], params["out_b"])
    return probs, masked_logits


# ----------------------------------------------------------------------------
# Model definition (deterministic parameter init, layer-stacked weights)
# ----------------------------------------------------------------------------

class Config:
    vocab_size = 128
    hidden = 32
    num_heads = 4
    num_layers = 2
    ff_dim = 64
    max_len = 16
    seq_len = 8
    mask_id = 127          # last vocab id acts as [MASK]


def init_params(cfg, key):
    ks = iter(jax.random.split(key, 16))
    s = 0.02
    L, H, F, V = cfg.num_layers, cfg.hidden, cfg.ff_dim, cfg.vocab_size

    def nrm(shape, dtype=jnp.float32):
        return (s * jax.random.normal(next(ks), shape)).astype(dtype)

    return {
        # embeddings stay f32 (gather is plain-JAX glue)
        "tok_emb": nrm((V, H)),
        "pos_emb": nrm((cfg.max_len, H)),
        # matmul weights: bf16 operands for the MXU (f32 accumulation)
        "wqkv": nrm((L, H, 3 * H), jnp.bfloat16),
        "bqkv": jnp.zeros((L, 1, 3 * H), jnp.float32),
        # wo kept f32: it is sliced per head on the sublane axis in-kernel
        # (f32 slices at multiples of 8 are tile-aligned); cast to bf16 at use.
        "wo": nrm((L, H, H), jnp.float32),
        "bo": jnp.zeros((L, 1, H), jnp.float32),
        "ln1_g": jnp.ones((L, 1, H), jnp.float32),
        "ln1_b": jnp.zeros((L, 1, H), jnp.float32),
        "w1": nrm((L, H, F), jnp.bfloat16),
        "b1": jnp.zeros((L, 1, F), jnp.float32),
        "w2": nrm((L, F, H), jnp.bfloat16),
        "b2": jnp.zeros((L, 1, H), jnp.float32),
        "ln2_g": jnp.ones((L, 1, H), jnp.float32),
        "ln2_b": jnp.zeros((L, 1, H), jnp.float32),
        "out_w": nrm((H, V), jnp.bfloat16),
        "out_b": jnp.zeros((1, V), jnp.float32),
    }


def dynamic_masking(x, len_token, cfg):
    """Deterministic stand-in for PreProcessing.dynamic_masking.

    Masks every position i with i % 5 == 1 and i < len_token.
    Returns (masked_input, mask_labels, masked_indices)."""
    S = x.shape[0]
    idx = jnp.arange(S)
    mask_labels = ((idx % 5 == 1) & (idx < len_token)).astype(jnp.int32)
    masked_input = jnp.where(mask_labels == 1, cfg.mask_id, x)
    masked_indices = [i for i in range(S) if (i % 5 == 1) and (i < len_token)]
    return masked_input, mask_labels, jnp.array(masked_indices, jnp.int32)


def mlm_roberta_forward(params, x, len_token, cfg):
    """Mirrors MLM_RoBERTa.forward: returns (probabilities, masked_logits,
    masked_labels)."""
    masked_input, mask_labels, masked_idx = dynamic_masking(x, len_token, cfg)
    S = cfg.seq_len

    # Embedding lookup (plain-JAX gather glue).
    h0 = (jnp.take(params["tok_emb"], masked_input, axis=0)
          + params["pos_emb"][:S]).astype(jnp.float32)

    # Key-side padding-mask bias: 0 for valid tokens, -1e30 for padding.
    attn_bias = jnp.where(jnp.arange(S) < len_token, 0.0, -1e30
                          ).astype(jnp.float32).reshape(1, S)

    probabilities, masked_logits = mlm_roberta_pallas(
        params, h0, attn_bias, masked_idx, cfg)

    # masked_select on the labels (tiny int gather, plain-JAX glue)
    masked_labels = jnp.take(x, masked_idx, axis=0)
    return probabilities, masked_logits, masked_labels


# ----------------------------------------------------------------------------
# Main
# ----------------------------------------------------------------------------

if __name__ == "__main__":
    cfg = Config()
    key = jax.random.PRNGKey(0)
    pkey, xkey = jax.random.split(key)

    params = init_params(cfg, pkey)

    # Example input: a single token-id sequence of length seq_len.
    x = jax.random.randint(xkey, (cfg.seq_len,), 0, cfg.vocab_size,
                           dtype=jnp.int32)
    len_token = cfg.seq_len  # number of real (non-pad) tokens

    probs, masked_logits, masked_labels = mlm_roberta_forward(
        params, x, len_token, cfg)
    jax.block_until_ready((probs, masked_logits, masked_labels))

    assert probs.shape == (cfg.seq_len, cfg.vocab_size)
    assert masked_logits.shape[1] == cfg.vocab_size
    assert masked_labels.shape[0] == masked_logits.shape[0]
    # probabilities rows must sum to 1
    assert bool(jnp.allclose(jnp.sum(probs, axis=-1), 1.0, atol=1e-5))

    print("KERNEL_OK")
</pallas_src>

<mosaic_0001>
module attributes {stable_mosaic.version = 11 : i64} {
  func.func @fused_roberta_kernel(%arg0: memref<2xi32, #tpu.memory_space<smem>>, %arg1: memref<1x8xf32, #tpu.memory_space<vmem>>, %arg2: memref<8x32xf32, #tpu.memory_space<vmem>>, %arg3: memref<2x32x96xbf16, #tpu.memory_space<vmem>>, %arg4: memref<2x1x96xf32, #tpu.memory_space<vmem>>, %arg5: memref<2x32x32xf32, #tpu.memory_space<vmem>>, %arg6: memref<2x1x32xf32, #tpu.memory_space<vmem>>, %arg7: memref<2x1x32xf32, #tpu.memory_space<vmem>>, %arg8: memref<2x1x32xf32, #tpu.memory_space<vmem>>, %arg9: memref<2x32x64xbf16, #tpu.memory_space<vmem>>, %arg10: memref<2x1x64xf32, #tpu.memory_space<vmem>>, %arg11: memref<2x64x32xbf16, #tpu.memory_space<vmem>>, %arg12: memref<2x1x32xf32, #tpu.memory_space<vmem>>, %arg13: memref<2x1x32xf32, #tpu.memory_space<vmem>>, %arg14: memref<2x1x32xf32, #tpu.memory_space<vmem>>, %arg15: memref<32x128xbf16, #tpu.memory_space<vmem>>, %arg16: memref<1x128xf32, #tpu.memory_space<vmem>>, %arg17: memref<8x128xf32, #tpu.memory_space<vmem>>, %arg18: memref<2x128xf32, #tpu.memory_space<vmem>>, %arg19: memref<8x128xf32, #tpu.memory_space<vmem>>) attributes {dimension_semantics = [], scalar_prefetch = 0 : i64, scratch_operands = 1 : i64, tpu.core_type = #tpu.core_type<tc>} {
    %c0 = arith.constant 0 : index
    %c0_0 = arith.constant 0 : index
    %0 = vector.load %arg2[%c0, %c0_0] : memref<8x32xf32, #tpu.memory_space<vmem>>, vector<8x32xf32>
    %c0_1 = arith.constant 0 : index
    %c0_2 = arith.constant 0 : index
    %1 = vector.load %arg1[%c0_1, %c0_2] : memref<1x8xf32, #tpu.memory_space<vmem>>, vector<1x8xf32>
    %2 = arith.truncf %0 : vector<8x32xf32> to vector<8x32xbf16>
    %c0_3 = arith.constant 0 : index
    %c0_4 = arith.constant 0 : index
    %c0_5 = arith.constant 0 : index
    %3 = vector.load %arg3[%c0_3, %c0_4, %c0_5] : memref<2x32x96xbf16, #tpu.memory_space<vmem>>, vector<1x32x96xbf16>
    %4 = vector.shape_cast %3 : vector<1x32x96xbf16> to vector<32x96xbf16>
    %cst = arith.constant dense<0.000000e+00> : vector<8x96xf32>
    %5 = tpu.matmul %2, %4, %cst {dimension_numbers = #tpu.dot_dimension_numbers<[1], [0], [0], [1], [0, 0, 1, 1], [], []>} : vector<8x32xbf16>, vector<32x96xbf16>, vector<8x96xf32> -> vector<8x96xf32>
    %c0_6 = arith.constant 0 : index
    %c0_7 = arith.constant 0 : index
    %c0_8 = arith.constant 0 : index
    %6 = vector.load %arg4[%c0_6, %c0_7, %c0_8] : memref<2x1x96xf32, #tpu.memory_space<vmem>>, vector<1x1x96xf32>
    %7 = vector.shape_cast %6 : vector<1x1x96xf32> to vector<1x96xf32>
    %8 = vector.broadcast %7 : vector<1x96xf32> to vector<8x96xf32>
    %9 = arith.addf %5, %8 : vector<8x96xf32>
    %c0_9 = arith.constant 0 : index
    %c0_10 = arith.constant 0 : index
    %c0_11 = arith.constant 0 : index
    %10 = vector.load %arg5[%c0_9, %c0_10, %c0_11] : memref<2x32x32xf32, #tpu.memory_space<vmem>>, vector<1x32x32xf32>
    %11 = vector.shape_cast %10 : vector<1x32x32xf32> to vector<32x32xf32>
    %cst_12 = arith.constant 0.000000e+00 : f32
    %12 = vector.broadcast %cst_12 : f32 to vector<8x32xf32>
    %13 = vector.extract_strided_slice %9 {offsets = [0, 0], sizes = [8, 8], strides = [1, 1]} : vector<8x96xf32> to vector<8x8xf32>
    %14 = arith.truncf %13 : vector<8x8xf32> to vector<8x8xbf16>
    %15 = vector.extract_strided_slice %9 {offsets = [0, 32], sizes = [8, 8], strides = [1, 1]} : vector<8x96xf32> to vector<8x8xf32>
    %16 = arith.truncf %15 : vector<8x8xf32> to vector<8x8xbf16>
    %17 = vector.extract_strided_slice %9 {offsets = [0, 64], sizes = [8, 8], strides = [1, 1]} : vector<8x96xf32> to vector<8x8xf32>
    %18 = arith.truncf %17 : vector<8x8xf32> to vector<8x8xbf16>
    %cst_13 = arith.constant dense<0.000000e+00> : vector<8x8xf32>
    %19 = tpu.matmul %14, %16, %cst_13 {dimension_numbers = #tpu.dot_dimension_numbers<[1], [1], [0], [0], [0, 0, 1, 0], [], []>} : vector<8x8xbf16>, vector<8x8xbf16>, vector<8x8xf32> -> vector<8x8xf32>
    %cst_14 = arith.constant 0.353553385 : f32
    %20 = vector.broadcast %cst_14 : f32 to vector<8x8xf32>
    %21 = arith.mulf %19, %20 : vector<8x8xf32>
    %22 = vector.broadcast %1 : vector<1x8xf32> to vector<8x8xf32>
    %23 = arith.addf %21, %22 : vector<8x8xf32>
    %cst_15 = arith.constant dense<0xFF800000> : vector<8xf32>
    %24 = vector.multi_reduction <maximumf>, %23, %cst_15 [1] : vector<8x8xf32> to vector<8xf32>
    %25 = vector.shape_cast %24 : vector<8xf32> to vector<8x1xf32>
    %26 = vector.broadcast %25 : vector<8x1xf32> to vector<8x8xf32>
    %27 = arith.subf %23, %26 : vector<8x8xf32>
    %28 = math.exp %27 : vector<8x8xf32>
    %cst_16 = arith.constant dense<0.000000e+00> : vector<8xf32>
    %29 = vector.multi_reduction <add>, %28, %cst_16 [1] : vector<8x8xf32> to vector<8xf32>
    %30 = vector.shape_cast %29 : vector<8xf32> to vector<8x1xf32>
    %31 = tpu.reciprocal %30 {approx = true} : vector<8x1xf32> -> vector<8x1xf32>
    %32 = vector.broadcast %31 : vector<8x1xf32> to vector<8x8xf32>
    %33 = arith.mulf %28, %32 : vector<8x8xf32>
    %34 = arith.truncf %33 : vector<8x8xf32> to vector<8x8xbf16>
    %cst_17 = arith.constant dense<0.000000e+00> : vector<8x8xf32>
    %35 = tpu.matmul %34, %18, %cst_17 {dimension_numbers = #tpu.dot_dimension_numbers<[1], [0], [0], [1], [0, 0, 1, 1], [], []>} : vector<8x8xbf16>, vector<8x8xbf16>, vector<8x8xf32> -> vector<8x8xf32>
    %36 = vector.extract_strided_slice %11 {offsets = [0, 0], sizes = [8, 32], strides = [1, 1]} : vector<32x32xf32> to vector<8x32xf32>
    %37 = arith.truncf %36 : vector<8x32xf32> to vector<8x32xbf16>
    %38 = arith.truncf %35 : vector<8x8xf32> to vector<8x8xbf16>
    %cst_18 = arith.constant dense<0.000000e+00> : vector<8x32xf32>
    %39 = tpu.matmul %38, %37, %cst_18 {dimension_numbers = #tpu.dot_dimension_numbers<[1], [0], [0], [1], [0, 0, 1, 1], [], []>} : vector<8x8xbf16>, vector<8x32xbf16>, vector<8x32xf32> -> vector<8x32xf32>
    %40 = arith.addf %12, %39 : vector<8x32xf32>
    %41 = vector.extract_strided_slice %9 {offsets = [0, 8], sizes = [8, 8], strides = [1, 1]} : vector<8x96xf32> to vector<8x8xf32>
    %42 = arith.truncf %41 : vector<8x8xf32> to vector<8x8xbf16>
    %43 = vector.extract_strided_slice %9 {offsets = [0, 40], sizes = [8, 8], strides = [1, 1]} : vector<8x96xf32> to vector<8x8xf32>
    %44 = arith.truncf %43 : vector<8x8xf32> to vector<8x8xbf16>
    %45 = vector.extract_strided_slice %9 {offsets = [0, 72], sizes = [8, 8], strides = [1, 1]} : vector<8x96xf32> to vector<8x8xf32>
    %46 = arith.truncf %45 : vector<8x8xf32> to vector<8x8xbf16>
    %cst_19 = arith.constant dense<0.000000e+00> : vector<8x8xf32>
    %47 = tpu.matmul %42, %44, %cst_19 {dimension_numbers = #tpu.dot_dimension_numbers<[1], [1], [0], [0], [0, 0, 1, 0], [], []>} : vector<8x8xbf16>, vector<8x8xbf16>, vector<8x8xf32> -> vector<8x8xf32>
    %cst_20 = arith.constant 0.353553385 : f32
    %48 = vector.broadcast %cst_20 : f32 to vector<8x8xf32>
    %49 = arith.mulf %47, %48 : vector<8x8xf32>
    %50 = vector.broadcast %1 : vector<1x8xf32> to vector<8x8xf32>
    %51 = arith.addf %49, %50 : vector<8x8xf32>
    %cst_21 = arith.constant dense<0xFF800000> : vector<8xf32>
    %52 = vector.multi_reduction <maximumf>, %51, %cst_21 [1] : vector<8x8xf32> to vector<8xf32>
    %53 = vector.shape_cast %52 : vector<8xf32> to vector<8x1xf32>
    %54 = vector.broadcast %53 : vector<8x1xf32> to vector<8x8xf32>
    %55 = arith.subf %51, %54 : vector<8x8xf32>
    %56 = math.exp %55 : vector<8x8xf32>
    %cst_22 = arith.constant dense<0.000000e+00> : vector<8xf32>
    %57 = vector.multi_reduction <add>, %56, %cst_22 [1] : vector<8x8xf32> to vector<8xf32>
    %58 = vector.shape_cast %57 : vector<8xf32> to vector<8x1xf32>
    %59 = tpu.reciprocal %58 {approx = true} : vector<8x1xf32> -> vector<8x1xf32>
    %60 = vector.broadcast %59 : vector<8x1xf32> to vector<8x8xf32>
    %61 = arith.mulf %56, %60 : vector<8x8xf32>
    %62 = arith.truncf %61 : vector<8x8xf32> to vector<8x8xbf16>
    %cst_23 = arith.constant dense<0.000000e+00> : vector<8x8xf32>
    %63 = tpu.matmul %62, %46, %cst_23 {dimension_numbers = #tpu.dot_dimension_numbers<[1], [0], [0], [1], [0, 0, 1, 1], [], []>} : vector<8x8xbf16>, vector<8x8xbf16>, vector<8x8xf32> -> vector<8x8xf32>
    %64 = vector.extract_strided_slice %11 {offsets = [8, 0], sizes = [8, 32], strides = [1, 1]} : vector<32x32xf32> to vector<8x32xf32>
    %65 = arith.truncf %64 : vector<8x32xf32> to vector<8x32xbf16>
    %66 = arith.truncf %63 : vector<8x8xf32> to vector<8x8xbf16>
    %cst_24 = arith.constant dense<0.000000e+00> : vector<8x32xf32>
    %67 = tpu.matmul %66, %65, %cst_24 {dimension_numbers = #tpu.dot_dimension_numbers<[1], [0], [0], [1], [0, 0, 1, 1], [], []>} : vector<8x8xbf16>, vector<8x32xbf16>, vector<8x32xf32> -> vector<8x32xf32>
    %68 = arith.addf %40, %67 : vector<8x32xf32>
    %69 = vector.extract_strided_slice %9 {offsets = [0, 16], sizes = [8, 8], strides = [1, 1]} : vector<8x96xf32> to vector<8x8xf32>
    %70 = arith.truncf %69 : vector<8x8xf32> to vector<8x8xbf16>
    %71 = vector.extract_strided_slice %9 {offsets = [0, 48], sizes = [8, 8], strides = [1, 1]} : vector<8x96xf32> to vector<8x8xf32>
    %72 = arith.truncf %71 : vector<8x8xf32> to vector<8x8xbf16>
    %73 = vector.extract_strided_slice %9 {offsets = [0, 80], sizes = [8, 8], strides = [1, 1]} : vector<8x96xf32> to vector<8x8xf32>
    %74 = arith.truncf %73 : vector<8x8xf32> to vector<8x8xbf16>
    %cst_25 = arith.constant dense<0.000000e+00> : vector<8x8xf32>
    %75 = tpu.matmul %70, %72, %cst_25 {dimension_numbers = #tpu.dot_dimension_numbers<[1], [1], [0], [0], [0, 0, 1, 0], [], []>} : vector<8x8xbf16>, vector<8x8xbf16>, vector<8x8xf32> -> vector<8x8xf32>
    %cst_26 = arith.constant 0.353553385 : f32
    %76 = vector.broadcast %cst_26 : f32 to vector<8x8xf32>
    %77 = arith.mulf %75, %76 : vector<8x8xf32>
    %78 = vector.broadcast %1 : vector<1x8xf32> to vector<8x8xf32>
    %79 = arith.addf %77, %78 : vector<8x8xf32>
    %cst_27 = arith.constant dense<0xFF800000> : vector<8xf32>
    %80 = vector.multi_reduction <maximumf>, %79, %cst_27 [1] : vector<8x8xf32> to vector<8xf32>
    %81 = vector.shape_cast %80 : vector<8xf32> to vector<8x1xf32>
    %82 = vector.broadcast %81 : vector<8x1xf32> to vector<8x8xf32>
    %83 = arith.subf %79, %82 : vector<8x8xf32>
    %84 = math.exp %83 : vector<8x8xf32>
    %cst_28 = arith.constant dense<0.000000e+00> : vector<8xf32>
    %85 = vector.multi_reduction <add>, %84, %cst_28 [1] : vector<8x8xf32> to vector<8xf32>
    %86 = vector.shape_cast %85 : vector<8xf32> to vector<8x1xf32>
    %87 = tpu.reciprocal %86 {approx = true} : vector<8x1xf32> -> vector<8x1xf32>
    %88 = vector.broadcast %87 : vector<8x1xf32> to vector<8x8xf32>
    %89 = arith.mulf %84, %88 : vector<8x8xf32>
    %90 = arith.truncf %89 : vector<8x8xf32> to vector<8x8xbf16>
    %cst_29 = arith.constant dense<0.000000e+00> : vector<8x8xf32>
    %91 = tpu.matmul %90, %74, %cst_29 {dimension_numbers = #tpu.dot_dimension_numbers<[1], [0], [0], [1], [0, 0, 1, 1], [], []>} : vector<8x8xbf16>, vector<8x8xbf16>, vector<8x8xf32> -> vector<8x8xf32>
    %92 = vector.extract_strided_slice %11 {offsets = [16, 0], sizes = [8, 32], strides = [1, 1]} : vector<32x32xf32> to vector<8x32xf32>
    %93 = arith.truncf %92 : vector<8x32xf32> to vector<8x32xbf16>
    %94 = arith.truncf %91 : vector<8x8xf32> to vector<8x8xbf16>
    %cst_30 = arith.constant dense<0.000000e+00> : vector<8x32xf32>
    %95 = tpu.matmul %94, %93, %cst_30 {dimension_numbers = #tpu.dot_dimension_numbers<[1], [0], [0], [1], [0, 0, 1, 1], [], []>} : vector<8x8xbf16>, vector<8x32xbf16>, vector<8x32xf32> -> vector<8x32xf32>
    %96 = arith.addf %68, %95 : vector<8x32xf32>
    %97 = vector.extract_strided_slice %9 {offsets = [0, 24], sizes = [8, 8], strides = [1, 1]} : vector<8x96xf32> to vector<8x8xf32>
    %98 = arith.truncf %97 : vector<8x8xf32> to vector<8x8xbf16>
    %99 = vector.extract_strided_slice %9 {offsets = [0, 56], sizes = [8, 8], strides = [1, 1]} : vector<8x96xf32> to vector<8x8xf32>
    %100 = arith.truncf %99 : vector<8x8xf32> to vector<8x8xbf16>
    %101 = vector.extract_strided_slice %9 {offsets = [0, 88], sizes = [8, 8], strides = [1, 1]} : vector<8x96xf32> to vector<8x8xf32>
    %102 = arith.truncf %101 : vector<8x8xf32> to vector<8x8xbf16>
    %cst_31 = arith.constant dense<0.000000e+00> : vector<8x8xf32>
    %103 = tpu.matmul %98, %100, %cst_31 {dimension_numbers = #tpu.dot_dimension_numbers<[1], [1], [0], [0], [0, 0, 1, 0], [], []>} : vector<8x8xbf16>, vector<8x8xbf16>, vector<8x8xf32> -> vector<8x8xf32>
    %cst_32 = arith.constant 0.353553385 : f32
    %104 = vector.broadcast %cst_32 : f32 to vector<8x8xf32>
    %105 = arith.mulf %103, %104 : vector<8x8xf32>
    %106 = vector.broadcast %1 : vector<1x8xf32> to vector<8x8xf32>
    %107 = arith.addf %105, %106 : vector<8x8xf32>
    %cst_33 = arith.constant dense<0xFF800000> : vector<8xf32>
    %108 = vector.multi_reduction <maximumf>, %107, %cst_33 [1] : vector<8x8xf32> to vector<8xf32>
    %109 = vector.shape_cast %108 : vector<8xf32> to vector<8x1xf32>
    %110 = vector.broadcast %109 : vector<8x1xf32> to vector<8x8xf32>
    %111 = arith.subf %107, %110 : vector<8x8xf32>
    %112 = math.exp %111 : vector<8x8xf32>
    %cst_34 = arith.constant dense<0.000000e+00> : vector<8xf32>
    %113 = vector.multi_reduction <add>, %112, %cst_34 [1] : vector<8x8xf32> to vector<8xf32>
    %114 = vector.shape_cast %113 : vector<8xf32> to vector<8x1xf32>
    %115 = tpu.reciprocal %114 {approx = true} : vector<8x1xf32> -> vector<8x1xf32>
    %116 = vector.broadcast %115 : vector<8x1xf32> to vector<8x8xf32>
    %117 = arith.mulf %112, %116 : vector<8x8xf32>
    %118 = arith.truncf %117 : vector<8x8xf32> to vector<8x8xbf16>
    %cst_35 = arith.constant dense<0.000000e+00> : vector<8x8xf32>
    %119 = tpu.matmul %118, %102, %cst_35 {dimension_numbers = #tpu.dot_dimension_numbers<[1], [0], [0], [1], [0, 0, 1, 1], [], []>} : vector<8x8xbf16>, vector<8x8xbf16>, vector<8x8xf32> -> vector<8x8xf32>
    %120 = vector.extract_strided_slice %11 {offsets = [24, 0], sizes = [8, 32], strides = [1, 1]} : vector<32x32xf32> to vector<8x32xf32>
    %121 = arith.truncf %120 : vector<8x32xf32> to vector<8x32xbf16>
    %122 = arith.truncf %119 : vector<8x8xf32> to vector<8x8xbf16>
    %cst_36 = arith.constant dense<0.000000e+00> : vector<8x32xf32>
    %123 = tpu.matmul %122, %121, %cst_36 {dimension_numbers = #tpu.dot_dimension_numbers<[1], [0], [0], [1], [0, 0, 1, 1], [], []>} : vector<8x8xbf16>, vector<8x32xbf16>, vector<8x32xf32> -> vector<8x32xf32>
    %124 = arith.addf %96, %123 : vector<8x32xf32>
    %c0_37 = arith.constant 0 : index
    %c0_38 = arith.constant 0 : index
    %c0_39 = arith.constant 0 : index
    %125 = vector.load %arg6[%c0_37, %c0_38, %c0_39] : memref<2x1x32xf32, #tpu.memory_space<vmem>>, vector<1x1x32xf32>
    %126 = vector.shape_cast %125 : vector<1x1x32xf32> to vector<1x32xf32>
    %127 = vector.broadcast %126 : vector<1x32xf32> to vector<8x32xf32>
    %128 = arith.addf %124, %127 : vector<8x32xf32>
    %129 = arith.addf %0, %128 : vector<8x32xf32>
    %c0_40 = arith.constant 0 : index
    %c0_41 = arith.constant 0 : index
    %c0_42 = arith.constant 0 : index
    %130 = vector.load %arg7[%c0_40, %c0_41, %c0_42] : memref<2x1x32xf32, #tpu.memory_space<vmem>>, vector<1x1x32xf32>
    %131 = vector.shape_cast %130 : vector<1x1x32xf32> to vector<1x32xf32>
    %c0_43 = arith.constant 0 : index
    %c0_44 = arith.constant 0 : index
    %c0_45 = arith.constant 0 : index
    %132 = vector.load %arg8[%c0_43, %c0_44, %c0_45] : memref<2x1x32xf32, #tpu.memory_space<vmem>>, vector<1x1x32xf32>
    %133 = vector.shape_cast %132 : vector<1x1x32xf32> to vector<1x32xf32>
    %cst_46 = arith.constant dense<0.000000e+00> : vector<8xf32>
    %134 = vector.multi_reduction <add>, %129, %cst_46 [1] : vector<8x32xf32> to vector<8xf32>
    %135 = vector.shape_cast %134 : vector<8xf32> to vector<8x1xf32>
    %cst_47 = arith.constant 3.200000e+01 : f32
    %136 = vector.broadcast %cst_47 : f32 to vector<8x1xf32>
    %137 = arith.divf %135, %136 : vector<8x1xf32>
    %138 = vector.broadcast %137 : vector<8x1xf32> to vector<8x32xf32>
    %139 = arith.subf %129, %138 : vector<8x32xf32>
    %140 = arith.mulf %139, %139 : vector<8x32xf32>
    %cst_48 = arith.constant dense<0.000000e+00> : vector<8xf32>
    %141 = vector.multi_reduction <add>, %140, %cst_48 [1] : vector<8x32xf32> to vector<8xf32>
    %142 = vector.shape_cast %141 : vector<8xf32> to vector<8x1xf32>
    %cst_49 = arith.constant 3.200000e+01 : f32
    %143 = vector.broadcast %cst_49 : f32 to vector<8x1xf32>
    %144 = arith.divf %142, %143 : vector<8x1xf32>
    %145 = vector.broadcast %137 : vector<8x1xf32> to vector<8x32xf32>
    %146 = arith.subf %129, %145 : vector<8x32xf32>
    %cst_50 = arith.constant 9.99999974E-6 : f32
    %147 = vector.broadcast %cst_50 : f32 to vector<8x1xf32>
    %148 = arith.addf %144, %147 : vector<8x1xf32>
    %149 = math.rsqrt %148 : vector<8x1xf32>
    %150 = vector.broadcast %149 : vector<8x1xf32> to vector<8x32xf32>
    %151 = arith.mulf %146, %150 : vector<8x32xf32>
    %152 = vector.broadcast %131 : vector<1x32xf32> to vector<8x32xf32>
    %153 = arith.mulf %151, %152 : vector<8x32xf32>
    %154 = vector.broadcast %133 : vector<1x32xf32> to vector<8x32xf32>
    %155 = arith.addf %153, %154 : vector<8x32xf32>
    %156 = arith.truncf %155 : vector<8x32xf32> to vector<8x32xbf16>
    %c0_51 = arith.constant 0 : index
    %c0_52 = arith.constant 0 : index
    %c0_53 = arith.constant 0 : index
    %157 = vector.load %arg9[%c0_51, %c0_52, %c0_53] : memref<2x32x64xbf16, #tpu.memory_space<vmem>>, vector<1x32x64xbf16>
    %158 = vector.shape_cast %157 : vector<1x32x64xbf16> to vector<32x64xbf16>
    %cst_54 = arith.constant dense<0.000000e+00> : vector<8x64xf32>
    %159 = tpu.matmul %156, %158, %cst_54 {dimension_numbers = #tpu.dot_dimension_numbers<[1], [0], [0], [1], [0, 0, 1, 1], [], []>} : vector<8x32xbf16>, vector<32x64xbf16>, vector<8x64xf32> -> vector<8x64xf32>
    %c0_55 = arith.constant 0 : index
    %c0_56 = arith.constant 0 : index
    %c0_57 = arith.constant 0 : index
    %160 = vector.load %arg10[%c0_55, %c0_56, %c0_57] : memref<2x1x64xf32, #tpu.memory_space<vmem>>, vector<1x1x64xf32>
    %161 = vector.shape_cast %160 : vector<1x1x64xf32> to vector<1x64xf32>
    %162 = vector.broadcast %161 : vector<1x64xf32> to vector<8x64xf32>
    %163 = arith.addf %159, %162 : vector<8x64xf32>
    %cst_58 = arith.constant 5.000000e-01 : f32
    %164 = vector.broadcast %cst_58 : f32 to vector<8x64xf32>
    %165 = arith.mulf %164, %163 : vector<8x64xf32>
    %cst_59 = arith.constant 1.41421354 : f32
    %166 = vector.broadcast %cst_59 : f32 to vector<8x64xf32>
    %167 = arith.divf %163, %166 : vector<8x64xf32>
    %cst_60 = arith.constant 0.000000e+00 : f32
    %168 = vector.broadcast %cst_60 : f32 to vector<8x64xf32>
    %169 = arith.cmpf oge, %167, %168 : vector<8x64xf32>
    %cst_61 = arith.constant 1.000000e+00 : f32
    %cst_62 = arith.constant -1.000000e+00 : f32
    %170 = vector.broadcast %cst_61 : f32 to vector<8x64xf32>
    %171 = vector.broadcast %cst_62 : f32 to vector<8x64xf32>
    %172 = arith.select %169, %170, %171 : vector<8x64xi1>, vector<8x64xf32>
    %173 = math.absf %167 : vector<8x64xf32>
    %cst_63 = arith.constant 0.327591091 : f32
    %174 = vector.broadcast %cst_63 : f32 to vector<8x64xf32>
    %175 = arith.mulf %174, %173 : vector<8x64xf32>
    %cst_64 = arith.constant 1.000000e+00 : f32
    %176 = vector.broadcast %cst_64 : f32 to vector<8x64xf32>
    %177 = arith.addf %176, %175 : vector<8x64xf32>
    %cst_65 = arith.constant 1.000000e+00 : f32
    %178 = vector.broadcast %cst_65 : f32 to vector<8x64xf32>
    %179 = arith.divf %178, %177 : vector<8x64xf32>
    %cst_66 = arith.constant 1.06140542 : f32
    %180 = vector.broadcast %cst_66 : f32 to vector<8x64xf32>
    %181 = arith.mulf %179, %180 : vector<8x64xf32>
    %cst_67 = arith.constant -1.45315206 : f32
    %182 = vector.broadcast %cst_67 : f32 to vector<8x64xf32>
    %183 = arith.addf %182, %181 : vector<8x64xf32>
    %184 = arith.mulf %179, %183 : vector<8x64xf32>
    %cst_68 = arith.constant 1.42141378 : f32
    %185 = vector.broadcast %cst_68 : f32 to vector<8x64xf32>
    %186 = arith.addf %185, %184 : vector<8x64xf32>
    %187 = arith.mulf %179, %186 : vector<8x64xf32>
    %cst_69 = arith.constant -0.284496725 : f32
    %188 = vector.broadcast %cst_69 : f32 to vector<8x64xf32>
    %189 = arith.addf %188, %187 : vector<8x64xf32>
    %190 = arith.mulf %179, %189 : vector<8x64xf32>
    %cst_70 = arith.constant 0.254829586 : f32
    %191 = vector.broadcast %cst_70 : f32 to vector<8x64xf32>
    %192 = arith.addf %191, %190 : vector<8x64xf32>
    %193 = arith.mulf %179, %192 : vector<8x64xf32>
    %cst_71 = arith.constant 0.000000e+00 : f32
    %194 = vector.broadcast %cst_71 : f32 to vector<8x64xf32>
    %195 = arith.subf %194, %173 : vector<8x64xf32>
    %196 = arith.mulf %195, %173 : vector<8x64xf32>
    %197 = math.exp %196 : vector<8x64xf32>
    %198 = arith.mulf %193, %197 : vector<8x64xf32>
    %cst_72 = arith.constant 1.000000e+00 : f32
    %199 = vector.broadcast %cst_72 : f32 to vector<8x64xf32>
    %200 = arith.subf %199, %198 : vector<8x64xf32>
    %201 = arith.mulf %172, %200 : vector<8x64xf32>
    %cst_73 = arith.constant 1.000000e+00 : f32
    %202 = vector.broadcast %cst_73 : f32 to vector<8x64xf32>
    %203 = arith.addf %202, %201 : vector<8x64xf32>
    %204 = arith.mulf %165, %203 : vector<8x64xf32>
    %205 = arith.truncf %204 : vector<8x64xf32> to vector<8x64xbf16>
    %c0_74 = arith.constant 0 : index
    %c0_75 = arith.constant 0 : index
    %c0_76 = arith.constant 0 : index
    %206 = vector.load %arg11[%c0_74, %c0_75, %c0_76] : memref<2x64x32xbf16, #tpu.memory_space<vmem>>, vector<1x64x32xbf16>
    %207 = vector.shape_cast %206 : vector<1x64x32xbf16> to vector<64x32xbf16>
    %cst_77 = arith.constant dense<0.000000e+00> : vector<8x32xf32>
    %208 = tpu.matmul %205, %207, %cst_77 {dimension_numbers = #tpu.dot_dimension_numbers<[1], [0], [0], [1], [0, 0, 1, 1], [], []>} : vector<8x64xbf16>, vector<64x32xbf16>, vector<8x32xf32> -> vector<8x32xf32>
    %c0_78 = arith.constant 0 : index
    %c0_79 = arith.constant 0 : index
    %c0_80 = arith.constant 0 : index
    %209 = vector.load %arg12[%c0_78, %c0_79, %c0_80] : memref<2x1x32xf32, #tpu.memory_space<vmem>>, vector<1x1x32xf32>
    %210 = vector.shape_cast %209 : vector<1x1x32xf32> to vector<1x32xf32>
    %211 = vector.broadcast %210 : vector<1x32xf32> to vector<8x32xf32>
    %212 = arith.addf %208, %211 : vector<8x32xf32>
    %213 = arith.addf %155, %212 : vector<8x32xf32>
    %c0_81 = arith.constant 0 : index
    %c0_82 = arith.constant 0 : index
    %c0_83 = arith.constant 0 : index
    %214 = vector.load %arg13[%c0_81, %c0_82, %c0_83] : memref<2x1x32xf32, #tpu.memory_space<vmem>>, vector<1x1x32xf32>
    %215 = vector.shape_cast %214 : vector<1x1x32xf32> to vector<1x32xf32>
    %c0_84 = arith.constant 0 : index
    %c0_85 = arith.constant 0 : index
    %c0_86 = arith.constant 0 : index
    %216 = vector.load %arg14[%c0_84, %c0_85, %c0_86] : memref<2x1x32xf32, #tpu.memory_space<vmem>>, vector<1x1x32xf32>
    %217 = vector.shape_cast %216 : vector<1x1x32xf32> to vector<1x32xf32>
    %cst_87 = arith.constant dense<0.000000e+00> : vector<8xf32>
    %218 = vector.multi_reduction <add>, %213, %cst_87 [1] : vector<8x32xf32> to vector<8xf32>
    %219 = vector.shape_cast %218 : vector<8xf32> to vector<8x1xf32>
    %cst_88 = arith.constant 3.200000e+01 : f32
    %220 = vector.broadcast %cst_88 : f32 to vector<8x1xf32>
    %221 = arith.divf %219, %220 : vector<8x1xf32>
    %222 = vector.broadcast %221 : vector<8x1xf32> to vector<8x32xf32>
    %223 = arith.subf %213, %222 : vector<8x32xf32>
    %224 = arith.mulf %223, %223 : vector<8x32xf32>
    %cst_89 = arith.constant dense<0.000000e+00> : vector<8xf32>
    %225 = vector.multi_reduction <add>, %224, %cst_89 [1] : vector<8x32xf32> to vector<8xf32>
    %226 = vector.shape_cast %225 : vector<8xf32> to vector<8x1xf32>
    %cst_90 = arith.constant 3.200000e+01 : f32
    %227 = vector.broadcast %cst_90 : f32 to vector<8x1xf32>
    %228 = arith.divf %226, %227 : vector<8x1xf32>
    %229 = vector.broadcast %221 : vector<8x1xf32> to vector<8x32xf32>
    %230 = arith.subf %213, %229 : vector<8x32xf32>
    %cst_91 = arith.constant 9.99999974E-6 : f32
    %231 = vector.broadcast %cst_91 : f32 to vector<8x1xf32>
    %232 = arith.addf %228, %231 : vector<8x1xf32>
    %233 = math.rsqrt %232 : vector<8x1xf32>
    %234 = vector.broadcast %233 : vector<8x1xf32> to vector<8x32xf32>
    %235 = arith.mulf %230, %234 : vector<8x32xf32>
    %236 = vector.broadcast %215 : vector<1x32xf32> to vector<8x32xf32>
    %237 = arith.mulf %235, %236 : vector<8x32xf32>
    %238 = vector.broadcast %217 : vector<1x32xf32> to vector<8x32xf32>
    %239 = arith.addf %237, %238 : vector<8x32xf32>
    %240 = arith.truncf %239 : vector<8x32xf32> to vector<8x32xbf16>
    %c1 = arith.constant 1 : index
    %c0_92 = arith.constant 0 : index
    %c0_93 = arith.constant 0 : index
    %241 = vector.load %arg3[%c1, %c0_92, %c0_93] : memref<2x32x96xbf16, #tpu.memory_space<vmem>>, vector<1x32x96xbf16>
    %242 = vector.shape_cast %241 : vector<1x32x96xbf16> to vector<32x96xbf16>
    %cst_94 = arith.constant dense<0.000000e+00> : vector<8x96xf32>
    %243 = tpu.matmul %240, %242, %cst_94 {dimension_numbers = #tpu.dot_dimension_numbers<[1], [0], [0], [1], [0, 0, 1, 1], [], []>} : vector<8x32xbf16>, vector<32x96xbf16>, vector<8x96xf32> -> vector<8x96xf32>
    %c1_95 = arith.constant 1 : index
    %c0_96 = arith.constant 0 : index
    %c0_97 = arith.constant 0 : index
    %244 = vector.load %arg4[%c1_95, %c0_96, %c0_97] : memref<2x1x96xf32, #tpu.memory_space<vmem>>, vector<1x1x96xf32>
    %245 = vector.shape_cast %244 : vector<1x1x96xf32> to vector<1x96xf32>
    %246 = vector.broadcast %245 : vector<1x96xf32> to vector<8x96xf32>
    %247 = arith.addf %243, %246 : vector<8x96xf32>
    %c1_98 = arith.constant 1 : index
    %c0_99 = arith.constant 0 : index
    %c0_100 = arith.constant 0 : index
    %248 = vector.load %arg5[%c1_98, %c0_99, %c0_100] : memref<2x32x32xf32, #tpu.memory_space<vmem>>, vector<1x32x32xf32>
    %249 = vector.shape_cast %248 : vector<1x32x32xf32> to vector<32x32xf32>
    %cst_101 = arith.constant 0.000000e+00 : f32
    %250 = vector.broadcast %cst_101 : f32 to vector<8x32xf32>
    %251 = vector.extract_strided_slice %247 {offsets = [0, 0], sizes = [8, 8], strides = [1, 1]} : vector<8x96xf32> to vector<8x8xf32>
    %252 = arith.truncf %251 : vector<8x8xf32> to vector<8x8xbf16>
    %253 = vector.extract_strided_slice %247 {offsets = [0, 32], sizes = [8, 8], strides = [1, 1]} : vector<8x96xf32> to vector<8x8xf32>
    %254 = arith.truncf %253 : vector<8x8xf32> to vector<8x8xbf16>
    %255 = vector.extract_strided_slice %247 {offsets = [0, 64], sizes = [8, 8], strides = [1, 1]} : vector<8x96xf32> to vector<8x8xf32>
    %256 = arith.truncf %255 : vector<8x8xf32> to vector<8x8xbf16>
    %cst_102 = arith.constant dense<0.000000e+00> : vector<8x8xf32>
    %257 = tpu.matmul %252, %254, %cst_102 {dimension_numbers = #tpu.dot_dimension_numbers<[1], [1], [0], [0], [0, 0, 1, 0], [], []>} : vector<8x8xbf16>, vector<8x8xbf16>, vector<8x8xf32> -> vector<8x8xf32>
    %cst_103 = arith.constant 0.353553385 : f32
    %258 = vector.broadcast %cst_103 : f32 to vector<8x8xf32>
    %259 = arith.mulf %257, %258 : vector<8x8xf32>
    %260 = vector.broadcast %1 : vector<1x8xf32> to vector<8x8xf32>
    %261 = arith.addf %259, %260 : vector<8x8xf32>
    %cst_104 = arith.constant dense<0xFF800000> : vector<8xf32>
    %262 = vector.multi_reduction <maximumf>, %261, %cst_104 [1] : vector<8x8xf32> to vector<8xf32>
    %263 = vector.shape_cast %262 : vector<8xf32> to vector<8x1xf32>
    %264 = vector.broadcast %263 : vector<8x1xf32> to vector<8x8xf32>
    %265 = arith.subf %261, %264 : vector<8x8xf32>
    %266 = math.exp %265 : vector<8x8xf32>
    %cst_105 = arith.constant dense<0.000000e+00> : vector<8xf32>
    %267 = vector.multi_reduction <add>, %266, %cst_105 [1] : vector<8x8xf32> to vector<8xf32>
    %268 = vector.shape_cast %267 : vector<8xf32> to vector<8x1xf32>
    %269 = tpu.reciprocal %268 {approx = true} : vector<8x1xf32> -> vector<8x1xf32>
    %270 = vector.broadcast %269 : vector<8x1xf32> to vector<8x8xf32>
    %271 = arith.mulf %266, %270 : vector<8x8xf32>
    %272 = arith.truncf %271 : vector<8x8xf32> to vector<8x8xbf16>
    %cst_106 = arith.constant dense<0.000000e+00> : vector<8x8xf32>
    %273 = tpu.matmul %272, %256, %cst_106 {dimension_numbers = #tpu.dot_dimension_numbers<[1], [0], [0], [1], [0, 0, 1, 1], [], []>} : vector<8x8xbf16>, vector<8x8xbf16>, vector<8x8xf32> -> vector<8x8xf32>
    %274 = vector.extract_strided_slice %249 {offsets = [0, 0], sizes = [8, 32], strides = [1, 1]} : vector<32x32xf32> to vector<8x32xf32>
    %275 = arith.truncf %274 : vector<8x32xf32> to vector<8x32xbf16>
    %276 = arith.truncf %273 : vector<8x8xf32> to vector<8x8xbf16>
    %cst_107 = arith.constant dense<0.000000e+00> : vector<8x32xf32>
    %277 = tpu.matmul %276, %275, %cst_107 {dimension_numbers = #tpu.dot_dimension_numbers<[1], [0], [0], [1], [0, 0, 1, 1], [], []>} : vector<8x8xbf16>, vector<8x32xbf16>, vector<8x32xf32> -> vector<8x32xf32>
    %278 = arith.addf %250, %277 : vector<8x32xf32>
    %279 = vector.extract_strided_slice %247 {offsets = [0, 8], sizes = [8, 8], strides = [1, 1]} : vector<8x96xf32> to vector<8x8xf32>
    %280 = arith.truncf %279 : vector<8x8xf32> to vector<8x8xbf16>
    %281 = vector.extract_strided_slice %247 {offsets = [0, 40], sizes = [8, 8], strides = [1, 1]} : vector<8x96xf32> to vector<8x8xf32>
    %282 = arith.truncf %281 : vector<8x8xf32> to vector<8x8xbf16>
    %283 = vector.extract_strided_slice %247 {offsets = [0, 72], sizes = [8, 8], strides = [1, 1]} : vector<8x96xf32> to vector<8x8xf32>
    %284 = arith.truncf %283 : vector<8x8xf32> to vector<8x8xbf16>
    %cst_108 = arith.constant dense<0.000000e+00> : vector<8x8xf32>
    %285 = tpu.matmul %280, %282, %cst_108 {dimension_numbers = #tpu.dot_dimension_numbers<[1], [1], [0], [0], [0, 0, 1, 0], [], []>} : vector<8x8xbf16>, vector<8x8xbf16>, vector<8x8xf32> -> vector<8x8xf32>
    %cst_109 = arith.constant 0.353553385 : f32
    %286 = vector.broadcast %cst_109 : f32 to vector<8x8xf32>
    %287 = arith.mulf %285, %286 : vector<8x8xf32>
    %288 = vector.broadcast %1 : vector<1x8xf32> to vector<8x8xf32>
    %289 = arith.addf %287, %288 : vector<8x8xf32>
    %cst_110 = arith.constant dense<0xFF800000> : vector<8xf32>
    %290 = vector.multi_reduction <maximumf>, %289, %cst_110 [1] : vector<8x8xf32> to vector<8xf32>
    %291 = vector.shape_cast %290 : vector<8xf32> to vector<8x1xf32>
    %292 = vector.broadcast %291 : vector<8x1xf32> to vector<8x8xf32>
    %293 = arith.subf %289, %292 : vector<8x8xf32>
    %294 = math.exp %293 : vector<8x8xf32>
    %cst_111 = arith.constant dense<0.000000e+00> : vector<8xf32>
    %295 = vector.multi_reduction <add>, %294, %cst_111 [1] : vector<8x8xf32> to vector<8xf32>
    %296 = vector.shape_cast %295 : vector<8xf32> to vector<8x1xf32>
    %297 = tpu.reciprocal %296 {approx = true} : vector<8x1xf32> -> vector<8x1xf32>
    %298 = vector.broadcast %297 : vector<8x1xf32> to vector<8x8xf32>
    %299 = arith.mulf %294, %298 : vector<8x8xf32>
    %300 = arith.truncf %299 : vector<8x8xf32> to vector<8x8xbf16>
    %cst_112 = arith.constant dense<0.000000e+00> : vector<8x8xf32>
    %301 = tpu.matmul %300, %284, %cst_112 {dimension_numbers = #tpu.dot_dimension_numbers<[1], [0], [0], [1], [0, 0, 1, 1], [], []>} : vector<8x8xbf16>, vector<8x8xbf16>, vector<8x8xf32> -> vector<8x8xf32>
    %302 = vector.extract_strided_slice %249 {offsets = [8, 0], sizes = [8, 32], strides = [1, 1]} : vector<32x32xf32> to vector<8x32xf32>
    %303 = arith.truncf %302 : vector<8x32xf32> to vector<8x32xbf16>
    %304 = arith.truncf %301 : vector<8x8xf32> to vector<8x8xbf16>
    %cst_113 = arith.constant dense<0.000000e+00> : vector<8x32xf32>
    %305 = tpu.matmul %304, %303, %cst_113 {dimension_numbers = #tpu.dot_dimension_numbers<[1], [0], [0], [1], [0, 0, 1, 1], [], []>} : vector<8x8xbf16>, vector<8x32xbf16>, vector<8x32xf32> -> vector<8x32xf32>
    %306 = arith.addf %278, %305 : vector<8x32xf32>
    %307 = vector.extract_strided_slice %247 {offsets = [0, 16], sizes = [8, 8], strides = [1, 1]} : vector<8x96xf32> to vector<8x8xf32>
    %308 = arith.truncf %307 : vector<8x8xf32> to vector<8x8xbf16>
    %309 = vector.extract_strided_slice %247 {offsets = [0, 48], sizes = [8, 8], strides = [1, 1]} : vector<8x96xf32> to vector<8x8xf32>
    %310 = arith.truncf %309 : vector<8x8xf32> to vector<8x8xbf16>
    %311 = vector.extract_strided_slice %247 {offsets = [0, 80], sizes = [8, 8], strides = [1, 1]} : vector<8x96xf32> to vector<8x8xf32>
    %312 = arith.truncf %311 : vector<8x8xf32> to vector<8x8xbf16>
    %cst_114 = arith.constant dense<0.000000e+00> : vector<8x8xf32>
    %313 = tpu.matmul %308, %310, %cst_114 {dimension_numbers = #tpu.dot_dimension_numbers<[1], [1], [0], [0], [0, 0, 1, 0], [], []>} : vector<8x8xbf16>, vector<8x8xbf16>, vector<8x8xf32> -> vector<8x8xf32>
    %cst_115 = arith.constant 0.353553385 : f32
    %314 = vector.broadcast %cst_115 : f32 to vector<8x8xf32>
    %315 = arith.mulf %313, %314 : vector<8x8xf32>
    %316 = vector.broadcast %1 : vector<1x8xf32> to vector<8x8xf32>
    %317 = arith.addf %315, %316 : vector<8x8xf32>
    %cst_116 = arith.constant dense<0xFF800000> : vector<8xf32>
    %318 = vector.multi_reduction <maximumf>, %317, %cst_116 [1] : vector<8x8xf32> to vector<8xf32>
    %319 = vector.shape_cast %318 : vector<8xf32> to vector<8x1xf32>
    %320 = vector.broadcast %319 : vector<8x1xf32> to vector<8x8xf32>
    %321 = arith.subf %317, %320 : vector<8x8xf32>
    %322 = math.exp %321 : vector<8x8xf32>
    %cst_117 = arith.constant dense<0.000000e+00> : vector<8xf32>
    %323 = vector.multi_reduction <add>, %322, %cst_117 [1] : vector<8x8xf32> to vector<8xf32>
    %324 = vector.shape_cast %323 : vector<8xf32> to vector<8x1xf32>
    %325 = tpu.reciprocal %324 {approx = true} : vector<8x1xf32> -> vector<8x1xf32>
    %326 = vector.broadcast %325 : vector<8x1xf32> to vector<8x8xf32>
    %327 = arith.mulf %322, %326 : vector<8x8xf32>
    %328 = arith.truncf %327 : vector<8x8xf32> to vector<8x8xbf16>
    %cst_118 = arith.constant dense<0.000000e+00> : vector<8x8xf32>
    %329 = tpu.matmul %328, %312, %cst_118 {dimension_numbers = #tpu.dot_dimension_numbers<[1], [0], [0], [1], [0, 0, 1, 1], [], []>} : vector<8x8xbf16>, vector<8x8xbf16>, vector<8x8xf32> -> vector<8x8xf32>
    %330 = vector.extract_strided_slice %249 {offsets = [16, 0], sizes = [8, 32], strides = [1, 1]} : vector<32x32xf32> to vector<8x32xf32>
    %331 = arith.truncf %330 : vector<8x32xf32> to vector<8x32xbf16>
    %332 = arith.truncf %329 : vector<8x8xf32> to vector<8x8xbf16>
    %cst_119 = arith.constant dense<0.000000e+00> : vector<8x32xf32>
    %333 = tpu.matmul %332, %331, %cst_119 {dimension_numbers = #tpu.dot_dimension_numbers<[1], [0], [0], [1], [0, 0, 1, 1], [], []>} : vector<8x8xbf16>, vector<8x32xbf16>, vector<8x32xf32> -> vector<8x32xf32>
    %334 = arith.addf %306, %333 : vector<8x32xf32>
    %335 = vector.extract_strided_slice %247 {offsets = [0, 24], sizes = [8, 8], strides = [1, 1]} : vector<8x96xf32> to vector<8x8xf32>
    %336 = arith.truncf %335 : vector<8x8xf32> to vector<8x8xbf16>
    %337 = vector.extract_strided_slice %247 {offsets = [0, 56], sizes = [8, 8], strides = [1, 1]} : vector<8x96xf32> to vector<8x8xf32>
    %338 = arith.truncf %337 : vector<8x8xf32> to vector<8x8xbf16>
    %339 = vector.extract_strided_slice %247 {offsets = [0, 88], sizes = [8, 8], strides = [1, 1]} : vector<8x96xf32> to vector<8x8xf32>
    %340 = arith.truncf %339 : vector<8x8xf32> to vector<8x8xbf16>
    %cst_120 = arith.constant dense<0.000000e+00> : vector<8x8xf32>
    %341 = tpu.matmul %336, %338, %cst_120 {dimension_numbers = #tpu.dot_dimension_numbers<[1], [1], [0], [0], [0, 0, 1, 0], [], []>} : vector<8x8xbf16>, vector<8x8xbf16>, vector<8x8xf32> -> vector<8x8xf32>
    %cst_121 = arith.constant 0.353553385 : f32
    %342 = vector.broadcast %cst_121 : f32 to vector<8x8xf32>
    %343 = arith.mulf %341, %342 : vector<8x8xf32>
    %344 = vector.broadcast %1 : vector<1x8xf32> to vector<8x8xf32>
    %345 = arith.addf %343, %344 : vector<8x8xf32>
    %cst_122 = arith.constant dense<0xFF800000> : vector<8xf32>
    %346 = vector.multi_reduction <maximumf>, %345, %cst_122 [1] : vector<8x8xf32> to vector<8xf32>
    %347 = vector.shape_cast %346 : vector<8xf32> to vector<8x1xf32>
    %348 = vector.broadcast %347 : vector<8x1xf32> to vector<8x8xf32>
    %349 = arith.subf %345, %348 : vector<8x8xf32>
    %350 = math.exp %349 : vector<8x8xf32>
    %cst_123 = arith.constant dense<0.000000e+00> : vector<8xf32>
    %351 = vector.multi_reduction <add>, %350, %cst_123 [1] : vector<8x8xf32> to vector<8xf32>
    %352 = vector.shape_cast %351 : vector<8xf32> to vector<8x1xf32>
    %353 = tpu.reciprocal %352 {approx = true} : vector<8x1xf32> -> vector<8x1xf32>
    %354 = vector.broadcast %353 : vector<8x1xf32> to vector<8x8xf32>
    %355 = arith.mulf %350, %354 : vector<8x8xf32>
    %356 = arith.truncf %355 : vector<8x8xf32> to vector<8x8xbf16>
    %cst_124 = arith.constant dense<0.000000e+00> : vector<8x8xf32>
    %357 = tpu.matmul %356, %340, %cst_124 {dimension_numbers = #tpu.dot_dimension_numbers<[1], [0], [0], [1], [0, 0, 1, 1], [], []>} : vector<8x8xbf16>, vector<8x8xbf16>, vector<8x8xf32> -> vector<8x8xf32>
    %358 = vector.extract_strided_slice %249 {offsets = [24, 0], sizes = [8, 32], strides = [1, 1]} : vector<32x32xf32> to vector<8x32xf32>
    %359 = arith.truncf %358 : vector<8x32xf32> to vector<8x32xbf16>
    %360 = arith.truncf %357 : vector<8x8xf32> to vector<8x8xbf16>
    %cst_125 = arith.constant dense<0.000000e+00> : vector<8x32xf32>
    %361 = tpu.matmul %360, %359, %cst_125 {dimension_numbers = #tpu.dot_dimension_numbers<[1], [0], [0], [1], [0, 0, 1, 1], [], []>} : vector<8x8xbf16>, vector<8x32xbf16>, vector<8x32xf32> -> vector<8x32xf32>
    %362 = arith.addf %334, %361 : vector<8x32xf32>
    %c1_126 = arith.constant 1 : index
    %c0_127 = arith.constant 0 : index
    %c0_128 = arith.constant 0 : index
    %363 = vector.load %arg6[%c1_126, %c0_127, %c0_128] : memref<2x1x32xf32, #tpu.memory_space<vmem>>, vector<1x1x32xf32>
    %364 = vector.shape_cast %363 : vector<1x1x32xf32> to vector<1x32xf32>
    %365 = vector.broadcast %364 : vector<1x32xf32> to vector<8x32xf32>
    %366 = arith.addf %362, %365 : vector<8x32xf32>
    %367 = arith.addf %239, %366 : vector<8x32xf32>
    %c1_129 = arith.constant 1 : index
    %c0_130 = arith.constant 0 : index
    %c0_131 = arith.constant 0 : index
    %368 = vector.load %arg7[%c1_129, %c0_130, %c0_131] : memref<2x1x32xf32, #tpu.memory_space<vmem>>, vector<1x1x32xf32>
    %369 = vector.shape_cast %368 : vector<1x1x32xf32> to vector<1x32xf32>
    %c1_132 = arith.constant 1 : index
    %c0_133 = arith.constant 0 : index
    %c0_134 = arith.constant 0 : index
    %370 = vector.load %arg8[%c1_132, %c0_133, %c0_134] : memref<2x1x32xf32, #tpu.memory_space<vmem>>, vector<1x1x32xf32>
    %371 = vector.shape_cast %370 : vector<1x1x32xf32> to vector<1x32xf32>
    %cst_135 = arith.constant dense<0.000000e+00> : vector<8xf32>
    %372 = vector.multi_reduction <add>, %367, %cst_135 [1] : vector<8x32xf32> to vector<8xf32>
    %373 = vector.shape_cast %372 : vector<8xf32> to vector<8x1xf32>
    %cst_136 = arith.constant 3.200000e+01 : f32
    %374 = vector.broadcast %cst_136 : f32 to vector<8x1xf32>
    %375 = arith.divf %373, %374 : vector<8x1xf32>
    %376 = vector.broadcast %375 : vector<8x1xf32> to vector<8x32xf32>
    %377 = arith.subf %367, %376 : vector<8x32xf32>
    %378 = arith.mulf %377, %377 : vector<8x32xf32>
    %cst_137 = arith.constant dense<0.000000e+00> : vector<8xf32>
    %379 = vector.multi_reduction <add>, %378, %cst_137 [1] : vector<8x32xf32> to vector<8xf32>
    %380 = vector.shape_cast %379 : vector<8xf32> to vector<8x1xf32>
    %cst_138 = arith.constant 3.200000e+01 : f32
    %381 = vector.broadcast %cst_138 : f32 to vector<8x1xf32>
    %382 = arith.divf %380, %381 : vector<8x1xf32>
    %383 = vector.broadcast %375 : vector<8x1xf32> to vector<8x32xf32>
    %384 = arith.subf %367, %383 : vector<8x32xf32>
    %cst_139 = arith.constant 9.99999974E-6 : f32
    %385 = vector.broadcast %cst_139 : f32 to vector<8x1xf32>
    %386 = arith.addf %382, %385 : vector<8x1xf32>
    %387 = math.rsqrt %386 : vector<8x1xf32>
    %388 = vector.broadcast %387 : vector<8x1xf32> to vector<8x32xf32>
    %389 = arith.mulf %384, %388 : vector<8x32xf32>
    %390 = vector.broadcast %369 : vector<1x32xf32> to vector<8x32xf32>
    %391 = arith.mulf %389, %390 : vector<8x32xf32>
    %392 = vector.broadcast %371 : vector<1x32xf32> to vector<8x32xf32>
    %393 = arith.addf %391, %392 : vector<8x32xf32>
    %394 = arith.truncf %393 : vector<8x32xf32> to vector<8x32xbf16>
    %c1_140 = arith.constant 1 : index
    %c0_141 = arith.constant 0 : index
    %c0_142 = arith.constant 0 : index
    %395 = vector.load %arg9[%c1_140, %c0_141, %c0_142] : memref<2x32x64xbf16, #tpu.memory_space<vmem>>, vector<1x32x64xbf16>
    %396 = vector.shape_cast %395 : vector<1x32x64xbf16> to vector<32x64xbf16>
    %cst_143 = arith.constant dense<0.000000e+00> : vector<8x64xf32>
    %397 = tpu.matmul %394, %396, %cst_143 {dimension_numbers = #tpu.dot_dimension_numbers<[1], [0], [0], [1], [0, 0, 1, 1], [], []>} : vector<8x32xbf16>, vector<32x64xbf16>, vector<8x64xf32> -> vector<8x64xf32>
    %c1_144 = arith.constant 1 : index
    %c0_145 = arith.constant 0 : index
    %c0_146 = arith.constant 0 : index
    %398 = vector.load %arg10[%c1_144, %c0_145, %c0_146] : memref<2x1x64xf32, #tpu.memory_space<vmem>>, vector<1x1x64xf32>
    %399 = vector.shape_cast %398 : vector<1x1x64xf32> to vector<1x64xf32>
    %400 = vector.broadcast %399 : vector<1x64xf32> to vector<8x64xf32>
    %401 = arith.addf %397, %400 : vector<8x64xf32>
    %cst_147 = arith.constant 5.000000e-01 : f32
    %402 = vector.broadcast %cst_147 : f32 to vector<8x64xf32>
    %403 = arith.mulf %402, %401 : vector<8x64xf32>
    %cst_148 = arith.constant 1.41421354 : f32
    %404 = vector.broadcast %cst_148 : f32 to vector<8x64xf32>
    %405 = arith.divf %401, %404 : vector<8x64xf32>
    %cst_149 = arith.constant 0.000000e+00 : f32
    %406 = vector.broadcast %cst_149 : f32 to vector<8x64xf32>
    %407 = arith.cmpf oge, %405, %406 : vector<8x64xf32>
    %cst_150 = arith.constant 1.000000e+00 : f32
    %cst_151 = arith.constant -1.000000e+00 : f32
    %408 = vector.broadcast %cst_150 : f32 to vector<8x64xf32>
    %409 = vector.broadcast %cst_151 : f32 to vector<8x64xf32>
    %410 = arith.select %407, %408, %409 : vector<8x64xi1>, vector<8x64xf32>
    %411 = math.absf %405 : vector<8x64xf32>
    %cst_152 = arith.constant 0.327591091 : f32
    %412 = vector.broadcast %cst_152 : f32 to vector<8x64xf32>
    %413 = arith.mulf %412, %411 : vector<8x64xf32>
    %cst_153 = arith.constant 1.000000e+00 : f32
    %414 = vector.broadcast %cst_153 : f32 to vector<8x64xf32>
    %415 = arith.addf %414, %413 : vector<8x64xf32>
    %cst_154 = arith.constant 1.000000e+00 : f32
    %416 = vector.broadcast %cst_154 : f32 to vector<8x64xf32>
    %417 = arith.divf %416, %415 : vector<8x64xf32>
    %cst_155 = arith.constant 1.06140542 : f32
    %418 = vector.broadcast %cst_155 : f32 to vector<8x64xf32>
    %419 = arith.mulf %417, %418 : vector<8x64xf32>
    %cst_156 = arith.constant -1.45315206 : f32
    %420 = vector.broadcast %cst_156 : f32 to vector<8x64xf32>
    %421 = arith.addf %420, %419 : vector<8x64xf32>
    %422 = arith.mulf %417, %421 : vector<8x64xf32>
    %cst_157 = arith.constant 1.42141378 : f32
    %423 = vector.broadcast %cst_157 : f32 to vector<8x64xf32>
    %424 = arith.addf %423, %422 : vector<8x64xf32>
    %425 = arith.mulf %417, %424 : vector<8x64xf32>
    %cst_158 = arith.constant -0.284496725 : f32
    %426 = vector.broadcast %cst_158 : f32 to vector<8x64xf32>
    %427 = arith.addf %426, %425 : vector<8x64xf32>
    %428 = arith.mulf %417, %427 : vector<8x64xf32>
    %cst_159 = arith.constant 0.254829586 : f32
    %429 = vector.broadcast %cst_159 : f32 to vector<8x64xf32>
    %430 = arith.addf %429, %428 : vector<8x64xf32>
    %431 = arith.mulf %417, %430 : vector<8x64xf32>
    %cst_160 = arith.constant 0.000000e+00 : f32
    %432 = vector.broadcast %cst_160 : f32 to vector<8x64xf32>
    %433 = arith.subf %432, %411 : vector<8x64xf32>
    %434 = arith.mulf %433, %411 : vector<8x64xf32>
    %435 = math.exp %434 : vector<8x64xf32>
    %436 = arith.mulf %431, %435 : vector<8x64xf32>
    %cst_161 = arith.constant 1.000000e+00 : f32
    %437 = vector.broadcast %cst_161 : f32 to vector<8x64xf32>
    %438 = arith.subf %437, %436 : vector<8x64xf32>
    %439 = arith.mulf %410, %438 : vector<8x64xf32>
    %cst_162 = arith.constant 1.000000e+00 : f32
    %440 = vector.broadcast %cst_162 : f32 to vector<8x64xf32>
    %441 = arith.addf %440, %439 : vector<8x64xf32>
    %442 = arith.mulf %403, %441 : vector<8x64xf32>
    %443 = arith.truncf %442 : vector<8x64xf32> to vector<8x64xbf16>
    %c1_163 = arith.constant 1 : index
    %c0_164 = arith.constant 0 : index
    %c0_165 = arith.constant 0 : index
    %444 = vector.load %arg11[%c1_163, %c0_164, %c0_165] : memref<2x64x32xbf16, #tpu.memory_space<vmem>>, vector<1x64x32xbf16>
    %445 = vector.shape_cast %444 : vector<1x64x32xbf16> to vector<64x32xbf16>
    %cst_166 = arith.constant dense<0.000000e+00> : vector<8x32xf32>
    %446 = tpu.matmul %443, %445, %cst_166 {dimension_numbers = #tpu.dot_dimension_numbers<[1], [0], [0], [1], [0, 0, 1, 1], [], []>} : vector<8x64xbf16>, vector<64x32xbf16>, vector<8x32xf32> -> vector<8x32xf32>
    %c1_167 = arith.constant 1 : index
    %c0_168 = arith.constant 0 : index
    %c0_169 = arith.constant 0 : index
    %447 = vector.load %arg12[%c1_167, %c0_168, %c0_169] : memref<2x1x32xf32, #tpu.memory_space<vmem>>, vector<1x1x32xf32>
    %448 = vector.shape_cast %447 : vector<1x1x32xf32> to vector<1x32xf32>
    %449 = vector.broadcast %448 : vector<1x32xf32> to vector<8x32xf32>
    %450 = arith.addf %446, %449 : vector<8x32xf32>
    %451 = arith.addf %393, %450 : vector<8x32xf32>
    %c1_170 = arith.constant 1 : index
    %c0_171 = arith.constant 0 : index
    %c0_172 = arith.constant 0 : index
    %452 = vector.load %arg13[%c1_170, %c0_171, %c0_172] : memref<2x1x32xf32, #tpu.memory_space<vmem>>, vector<1x1x32xf32>
    %453 = vector.shape_cast %452 : vector<1x1x32xf32> to vector<1x32xf32>
    %c1_173 = arith.constant 1 : index
    %c0_174 = arith.constant 0 : index
    %c0_175 = arith.constant 0 : index
    %454 = vector.load %arg14[%c1_173, %c0_174, %c0_175] : memref<2x1x32xf32, #tpu.memory_space<vmem>>, vector<1x1x32xf32>
    %455 = vector.shape_cast %454 : vector<1x1x32xf32> to vector<1x32xf32>
    %cst_176 = arith.constant dense<0.000000e+00> : vector<8xf32>
    %456 = vector.multi_reduction <add>, %451, %cst_176 [1] : vector<8x32xf32> to vector<8xf32>
    %457 = vector.shape_cast %456 : vector<8xf32> to vector<8x1xf32>
    %cst_177 = arith.constant 3.200000e+01 : f32
    %458 = vector.broadcast %cst_177 : f32 to vector<8x1xf32>
    %459 = arith.divf %457, %458 : vector<8x1xf32>
    %460 = vector.broadcast %459 : vector<8x1xf32> to vector<8x32xf32>
    %461 = arith.subf %451, %460 : vector<8x32xf32>
    %462 = arith.mulf %461, %461 : vector<8x32xf32>
    %cst_178 = arith.constant dense<0.000000e+00> : vector<8xf32>
    %463 = vector.multi_reduction <add>, %462, %cst_178 [1] : vector<8x32xf32> to vector<8xf32>
    %464 = vector.shape_cast %463 : vector<8xf32> to vector<8x1xf32>
    %cst_179 = arith.constant 3.200000e+01 : f32
    %465 = vector.broadcast %cst_179 : f32 to vector<8x1xf32>
    %466 = arith.divf %464, %465 : vector<8x1xf32>
    %467 = vector.broadcast %459 : vector<8x1xf32> to vector<8x32xf32>
    %468 = arith.subf %451, %467 : vector<8x32xf32>
    %cst_180 = arith.constant 9.99999974E-6 : f32
    %469 = vector.broadcast %cst_180 : f32 to vector<8x1xf32>
    %470 = arith.addf %466, %469 : vector<8x1xf32>
    %471 = math.rsqrt %470 : vector<8x1xf32>
    %472 = vector.broadcast %471 : vector<8x1xf32> to vector<8x32xf32>
    %473 = arith.mulf %468, %472 : vector<8x32xf32>
    %474 = vector.broadcast %453 : vector<1x32xf32> to vector<8x32xf32>
    %475 = arith.mulf %473, %474 : vector<8x32xf32>
    %476 = vector.broadcast %455 : vector<1x32xf32> to vector<8x32xf32>
    %477 = arith.addf %475, %476 : vector<8x32xf32>
    %478 = arith.truncf %477 : vector<8x32xf32> to vector<8x32xbf16>
    %c0_181 = arith.constant 0 : index
    %c0_182 = arith.constant 0 : index
    %479 = vector.load %arg15[%c0_181, %c0_182] : memref<32x128xbf16, #tpu.memory_space<vmem>>, vector<32x128xbf16>
    %cst_183 = arith.constant dense<0.000000e+00> : vector<8x128xf32>
    %480 = tpu.matmul %478, %479, %cst_183 {dimension_numbers = #tpu.dot_dimension_numbers<[1], [0], [0], [1], [0, 0, 1, 1], [], []>} : vector<8x32xbf16>, vector<32x128xbf16>, vector<8x128xf32> -> vector<8x128xf32>
    %c0_184 = arith.constant 0 : index
    %c0_185 = arith.constant 0 : index
    %481 = vector.load %arg16[%c0_184, %c0_185] : memref<1x128xf32, #tpu.memory_space<vmem>>, vector<1x128xf32>
    %482 = vector.broadcast %481 : vector<1x128xf32> to vector<8x128xf32>
    %483 = arith.addf %480, %482 : vector<8x128xf32>
    %c0_186 = arith.constant 0 : index
    %c0_187 = arith.constant 0 : index
    %484 = vector.load %arg19[%c0_186, %c0_187] : memref<8x128xf32, #tpu.memory_space<vmem>>, vector<8x128xf32>
    tpu.vector_store %arg19[%c0_186, %c0_187], %483 {strides = array<i32>} : memref<8x128xf32, #tpu.memory_space<vmem>>, vector<8x128xf32>,
    %cst_188 = arith.constant dense<0xFF800000> : vector<8xf32>
    %485 = vector.multi_reduction <maximumf>, %483, %cst_188 [1] : vector<8x128xf32> to vector<8xf32>
    %486 = vector.shape_cast %485 : vector<8xf32> to vector<8x1xf32>
    %487 = vector.broadcast %486 : vector<8x1xf32> to vector<8x128xf32>
    %488 = arith.subf %483, %487 : vector<8x128xf32>
    %489 = math.exp %488 : vector<8x128xf32>
    %cst_189 = arith.constant dense<0.000000e+00> : vector<8xf32>
    %490 = vector.multi_reduction <add>, %489, %cst_189 [1] : vector<8x128xf32> to vector<8xf32>
    %491 = vector.shape_cast %490 : vector<8xf32> to vector<8x1xf32>
    %492 = vector.broadcast %491 : vector<8x1xf32> to vector<8x128xf32>
    %493 = arith.divf %489, %492 : vector<8x128xf32>
    %c0_190 = arith.constant 0 : index
    %c0_191 = arith.constant 0 : index
    %494 = vector.load %arg17[%c0_190, %c0_191] : memref<8x128xf32, #tpu.memory_space<vmem>>, vector<8x128xf32>
    tpu.vector_store %arg17[%c0_190, %c0_191], %493 {strides = array<i32>} : memref<8x128xf32, #tpu.memory_space<vmem>>, vector<8x128xf32>,
    %c0_192 = arith.constant 0 : index
    %495 = memref.load %arg0[%c0_192] : memref<2xi32, #tpu.memory_space<smem>>
    %496 = arith.index_cast %495 : i32 to index
    %c0_193 = arith.constant 0 : index
    %497 = vector.load %arg19[%496, %c0_193] : memref<8x128xf32, #tpu.memory_space<vmem>>, vector<1x128xf32>
    %c0_194 = arith.constant 0 : index
    %c0_195 = arith.constant 0 : index
    %498 = vector.load %arg18[%c0_194, %c0_195] : memref<2x128xf32, #tpu.memory_space<vmem>>, vector<1x128xf32>
    tpu.vector_store %arg18[%c0_194, %c0_195], %497 {strides = array<i32>} : memref<2x128xf32, #tpu.memory_space<vmem>>, vector<1x128xf32>,
    %c1_196 = arith.constant 1 : index
    %499 = memref.load %arg0[%c1_196] : memref<2xi32, #tpu.memory_space<smem>>
    %500 = arith.index_cast %499 : i32 to index
    %c0_197 = arith.constant 0 : index
    %501 = vector.load %arg19[%500, %c0_197] : memref<8x128xf32, #tpu.memory_space<vmem>>, vector<1x128xf32>
    %c1_198 = arith.constant 1 : index
    %c0_199 = arith.constant 0 : index
    %502 = vector.load %arg18[%c1_198, %c0_199] : memref<2x128xf32, #tpu.memory_space<vmem>>, vector<1x128xf32>
    tpu.vector_store %arg18[%c1_198, %c0_199], %501 {strides = array<i32>} : memref<2x128xf32, #tpu.memory_space<vmem>>, vector<1x128xf32>,
    return
  }
}

</mosaic_0001>

<bundles_post_ra>
// kernel: tpu_custom_call.1
= control target key start
LH: loop header
LB: loop body
LE: loop exit
PB: predicated region body
PF: predicated region fallthrough
CT: control target
= control target key end

     0   :  { %s3662_s0 = inlined_call_operand.vmem [shape: s32[2], index: 0, kind: input, shape index: {}]   ;;  %s3663_s1 = inlined_call_operand.hbm [shape: f32[1,8], index: 1, kind: input, shape index: {}]   ;;  %s3664_s2 = inlined_call_operand.hbm [shape: f32[8,32], index: 2, kind: input, shape index: {}]   ;;  %s3665_s3 = inlined_call_operand.vmem [shape: bf16[2,32,96], index: 3, kind: input, shape index: {}]   ;;  %s3666_s4 = inlined_call_operand.hbm [shape: f32[2,1,96], index: 4, kind: input, shape index: {}]   ;;  %s3667_s5 = inlined_call_operand.vmem [shape: f32[2,32,32], index: 5, kind: input, shape index: {}]   ;;  %s3668_s6 = inlined_call_operand.hbm [shape: f32[2,1,32], index: 6, kind: input, shape index: {}]   ;;  %s3669_s7 = inlined_call_operand.hbm [shape: f32[2,1,32], index: 7, kind: input, shape index: {}]   ;;  %s3670_s8 = inlined_call_operand.hbm [shape: f32[2,1,32], index: 8, kind: input, shape index: {}]   ;;  %s3671_s9 = inlined_call_operand.hbm [shape: bf16[2,32,64], index: 9, kind: input, shape index: {}]   ;;  %s3672_s10 = inlined_call_operand.hbm [shape: f32[2,1,64], index: 10, kind: input, shape index: {}]   ;;  %s3673_s11 = inlined_call_operand.vmem [shape: bf16[2,64,32], index: 11, kind: input, shape index: {}]   ;;  %s3674_s12 = inlined_call_operand.hbm [shape: f32[2,1,32], index: 12, kind: input, shape index: {}]   ;;  %s3675_s13 = inlined_call_operand.hbm [shape: f32[2,1,32], index: 13, kind: input, shape index: {}]   ;;  %s3676_s14 = inlined_call_operand.vmem [shape: f32[2,1,32], index: 14, kind: input, shape index: {}]   ;;  %s3677_s15 = inlined_call_operand.vmem [shape: bf16[32,128], index: 15, kind: input, shape index: {}]   ;;  %s3678_s16 = inlined_call_operand.vmem [shape: f32[1,128], index: 16, kind: input, shape index: {}]   ;;  %s3679_s17 = inlined_call_operand.hbm [shape: f32[8,128], index: 17, kind: output, shape index: {0}]   ;;  %s3680_s18 = inlined_call_operand.hbm [shape: f32[2,128], index: 18, kind: output, shape index: {1}]  }
   0x1   :  { %3685 = sst [smem:[#allocation34_spill]] %s3662_s0 }
   0x2   :  { %3686 = sst [smem:[#allocation35_spill]] %s3663_s1 }
   0x3   :  { %3687 = sst [smem:[#allocation36_spill]] %s3664_s2 }
   0x4   :  { %3688 = sst [smem:[#allocation37_spill]] %s3679_s17 }
   0x5   :  { %3689 = sst [smem:[#allocation38_spill]] %s3680_s18 }
   0x6   :  { %24 = vsyncpa [#allocation6], 0 }
   0x7   :  { %25 = vsyncpa [#allocation4], 0 }
   0x8   :  { %26 = vsyncpa [#allocation9], 0 }
   0x9   :  { %27 = vsyncpa [#allocation12], 0 }
   0xa   :  { %28 = vsyncpa [#allocation15], 0 }
   0xb   :  { %29 = vsyncpa [#allocation18], 0 }
   0xc   :  { %30 = vsyncpa [#allocation21], 0 }
   0xd   :  { %31 = vsyncpa [#allocation5], 0 }
   0xe   :  { %32 = vsyncpa [#allocation24], 0  ;;  %s3031_s27 = smov [#allocation8]   ;;  %s3690_s0 = sld [smem:[#allocation36_spill]] }
   0xf   :  { %s59_s28 = sshll.u32 %s3031_s27, 4  ;;  %s60_s28 = int_to_ptr.vmem [resolvable:$true] %s59_s28 }
  0x14   :  { %s2737_s19 = scalar_lea.hbm %s3690_s0, 128 }
  0x15   :  { %p2738_p0 = scmp.ne.s32.totalorder %s3690_s0, %s2737_s19  ;;  %p2741_p1 = scmp.lt.u32.totalorder %s2737_s19, %s3690_s0 }
  0x17   :  { %p2743_p2 = pnand %p2741_p1, %p2738_p0 }
  0x19   :  { %2746 = shalt.err (!%p2743_p2)
}
  0x1a   :  { %s2747_s2 = scalar_lea.vmem %s60_s28, 128  ;;  %p2752_p4 = scmp.lt.s32.totalorder %s60_s28, %s60_s28 }
  0x1b   :  { %p2748_p3 = scmp.ne.s32.totalorder %s60_s28, %s2747_s2  ;;  %p2753_p5 = scmp.lt.s32.totalorder %s2747_s2, %s2747_s2 }
  0x1d   :  { %p2754_p6 = por %p2753_p5, %p2752_p4 }
  0x1f   :  { %p2755_p7 = pnand %p2754_p6, %p2748_p3 }
  0x21   :  { %2758 = shalt.err (!%p2755_p7)
}
  0x22   :  { %62 = dma.hbm_to_vmem [thread:$0]  %s3690_s0, 128, %s60_s28, [#allocation9]  }
  0x23   :  { %s3032_s25 = smov [#allocation11]   ;;  %s3033_s27 = smov [#allocation14]  }
  0x24   :  { %s84_s26 = sshll.u32 %s3032_s25, 4  ;;  %s108_s29 = sshll.u32 %s3033_s27, 4  ;;  %s85_s26 = int_to_ptr.vmem [resolvable:$true] %s84_s26  ;;  %s109_s29 = int_to_ptr.vmem [resolvable:$true] %s108_s29 }
  0x25   :  { %s2759_s1 = scalar_lea.hbm %s3668_s6, 32 }
  0x26   :  { %p2760_p8 = scmp.ne.s32.totalorder %s3668_s6, %s2759_s1  ;;  %p2763_p9 = scmp.lt.u32.totalorder %s2759_s1, %s3668_s6 }
  0x28   :  { %p2765_p10 = pnand %p2763_p9, %p2760_p8 }
  0x2a   :  { %2768 = shalt.err (!%p2765_p10)
}
  0x2b   :  { %s2769_s28 = scalar_lea.vmem %s85_s26, 32  ;;  %p2774_p12 = scmp.lt.s32.totalorder %s85_s26, %s85_s26 }
  0x2c   :  { %p2770_p11 = scmp.ne.s32.totalorder %s85_s26, %s2769_s28  ;;  %p2775_p13 = scmp.lt.s32.totalorder %s2769_s28, %s2769_s28 }
  0x2e   :  { %p2776_p0 = por %p2775_p13, %p2774_p12 }
  0x30   :  { %p2777_p1 = pnand %p2776_p0, %p2770_p11 }
  0x32   :  { %2780 = shalt.err (!%p2777_p1)
}
  0x33   :  { %s3034_s0 = smov 16   ;;  %s3035_s23 = smov 1  }
  0x34   :  { %90 = dma.hbm_to_vmem [thread:$0]  %s3668_s6, 32, %s85_s26, [#allocation12], %s3034_s0, %s3034_s0, %s3035_s23  }
  0x35   :  { %s2781_s19 = scalar_lea.hbm %s3670_s8, 32 }
  0x36   :  { %p2782_p2 = scmp.ne.s32.totalorder %s3670_s8, %s2781_s19  ;;  %p2785_p3 = scmp.lt.u32.totalorder %s2781_s19, %s3670_s8 }
  0x38   :  { %p2787_p4 = pnand %p2785_p3, %p2782_p2 }
  0x3a   :  { %2790 = shalt.err (!%p2787_p4)
}
  0x3b   :  { %s2791_s2 = scalar_lea.vmem %s109_s29, 32  ;;  %p2796_p6 = scmp.lt.s32.totalorder %s109_s29, %s109_s29 }
  0x3c   :  { %p2792_p5 = scmp.ne.s32.totalorder %s109_s29, %s2791_s2  ;;  %p2797_p7 = scmp.lt.s32.totalorder %s2791_s2, %s2791_s2 }
  0x3e   :  { %p2798_p8 = por %p2797_p7, %p2796_p6 }
  0x40   :  { %p2799_p9 = pnand %p2798_p8, %p2792_p5 }
  0x42   :  { %2802 = shalt.err (!%p2799_p9)
}
  0x43   :  { %114 = dma.hbm_to_vmem [thread:$0]  %s3670_s8, 32, %s109_s29, [#allocation15], %s3034_s0, %s3034_s0, %s3035_s23  }
  0x44   :  { %s3036_s28 = smov [#allocation17]   ;;  %s3691_s30 = sld [smem:[#allocation34_spill]] }
  0x45   :  { %s132_s24 = sshll.u32 %s3036_s28, 4  ;;  %s2803_s21 = scalar_lea.hbm %s3672_s10, 32  ;;  %s133_s24 = int_to_ptr.vmem [resolvable:$true] %s132_s24 }
  0x46   :  { %p2804_p10 = scmp.ne.s32.totalorder %s3672_s10, %s2803_s21  ;;  %p2807_p11 = scmp.lt.u32.totalorder %s2803_s21, %s3672_s10 }
  0x48   :  { %p2809_p12 = pnand %p2807_p11, %p2804_p10 }
  0x4a   :  { %s39_s19 = sshll.u32 %s3691_s30, 4  ;;  %s40_s19 = int_to_ptr.vmem [resolvable:$true] %s39_s19 }
  0x4b   :  { %2812 = shalt.err (!%p2809_p12)
}
  0x4c   :  { %s2813_s8 = scalar_lea.vmem %s133_s24, 32  ;;  %p2818_p0 = scmp.lt.s32.totalorder %s133_s24, %s133_s24 }
  0x4d   :  { %p2814_p13 = scmp.ne.s32.totalorder %s133_s24, %s2813_s8  ;;  %p2819_p1 = scmp.lt.s32.totalorder %s2813_s8, %s2813_s8 }
  0x4f   :  { %p2820_p2 = por %p2819_p1, %p2818_p0 }
  0x51   :  { %p2821_p3 = pnand %p2820_p2, %p2814_p13 }
  0x53   :  { %2824 = shalt.err (!%p2821_p3)
}
  0x54   :  { %138 = dma.hbm_to_vmem [thread:$0]  %s3672_s10, 32, %s133_s24, [#allocation18], %s3034_s0, %s3034_s0, %s3035_s23  }
  0x55   :  { %s2825_s26 = scalar_lea.vmem %s40_s19, 16  ;;  %p2830_p5 = scmp.lt.s32.totalorder %s40_s19, %s40_s19 }
  0x56   :  { %p2826_p4 = scmp.ne.s32.totalorder %s40_s19, %s2825_s26  ;;  %p2831_p6 = scmp.lt.s32.totalorder %s2825_s26, %s2825_s26 }
  0x58   :  { %p2832_p7 = por %p2831_p6, %p2830_p5 }
  0x5a   :  { %p2833_p8 = pnand %p2832_p7, %p2826_p4 }
  0x5c   :  { %2836 = shalt.err (!%p2833_p8)
}
  0x5d   :  { %s3037_s17 = smov [#allocation3]   ;;  %s3038_s18 = smov [#allocation7]  }
  0x5e   :  { %42 = dma.vmem_to_smem %s40_s19, 16, %s3037_s17, [#allocation6]  }
  0x5f   :  { %s49_s28 = sshll.u32 %s3038_s18, 4  ;;  %s3039_s25 = smov [#allocation10]   ;;  %s50_s28 = int_to_ptr.vmem [resolvable:$true] %s49_s28 }
  0x60   :  { %s70_s27 = sshll.u32 %s3039_s25, 4  ;;  %s3692_s20 = sld [smem:[#allocation35_spill]]  ;;  %s71_s27 = int_to_ptr.vmem [resolvable:$true] %s70_s27 }
  0x66   :  { %s2837_s21 = scalar_lea.hbm %s3692_s20, 16 }
  0x67   :  { %p2838_p9 = scmp.ne.s32.totalorder %s3692_s20, %s2837_s21  ;;  %p2841_p10 = scmp.lt.u32.totalorder %s2837_s21, %s3692_s20 }
  0x69   :  { %p2843_p11 = pnand %p2841_p10, %p2838_p9 }
  0x6b   :  { %2846 = shalt.err (!%p2843_p11)
}
  0x6c   :  { %s2847_s19 = scalar_lea.vmem %s50_s28, 16  ;;  %s2851_s8 = scalar_lea.vmem %s50_s28, 32 }
  0x6d   :  { %p2848_p12 = scmp.ne.s32.totalorder %s50_s28, %s2847_s19  ;;  %p2852_p13 = scmp.lt.s32.totalorder %s50_s28, %s50_s28 }
  0x6e   :  { %p2853_p0 = scmp.lt.s32.totalorder %s2851_s8, %s2847_s19 }
  0x70   :  { %p2854_p1 = por %p2853_p0, %p2852_p13 }
  0x72   :  { %p2855_p2 = pnand %p2854_p1, %p2848_p12 }
  0x74   :  { %2858 = shalt.err (!%p2855_p2)
}
  0x75   :  { %52 = dma.hbm_to_vmem [thread:$0]  %s3692_s20, 16, %s50_s28, [#allocation4]  }
  0x76   :  { %s2859_s18 = scalar_lea.hbm %s3666_s4, 32 }
  0x77   :  { %p2860_p3 = scmp.ne.s32.totalorder %s3666_s4, %s2859_s18  ;;  %p2863_p4 = scmp.lt.u32.totalorder %s2859_s18, %s3666_s4 }
  0x79   :  { %p2865_p5 = pnand %p2863_p4, %p2860_p3 }
  0x7b   :  { %2868 = shalt.err (!%p2865_p5)
}
  0x7c   :  { %s2869_s22 = scalar_lea.vmem %s71_s27, 32  ;;  %p2874_p7 = scmp.lt.s32.totalorder %s71_s27, %s71_s27 }
  0x7d   :  { %p2870_p6 = scmp.ne.s32.totalorder %s71_s27, %s2869_s22  ;;  %p2875_p8 = scmp.lt.s32.totalorder %s2869_s22, %s2869_s22 }
  0x7f   :  { %p2876_p9 = por %p2875_p8, %p2874_p7 }
  0x81   :  { %p2877_p10 = pnand %p2876_p9, %p2870_p6 }
  0x83   :  { %2880 = shalt.err (!%p2877_p10)
}
  0x84   :  { %76 = dma.hbm_to_vmem [thread:$0]  %s3666_s4, 32, %s71_s27, [#allocation9], %s3034_s0, %s3034_s0, %s3035_s23  }
  0x85   :  { %s3040_s10 = smov [#allocation13]   ;;  %s3041_s2 = smov [#allocation16]  }
  0x86   :  { %s96_s24 = sshll.u32 %s3040_s10, 4  ;;  %s120_s19 = sshll.u32 %s3041_s2, 4  ;;  %s97_s24 = int_to_ptr.vmem [resolvable:$true] %s96_s24  ;;  %s121_s19 = int_to_ptr.vmem [resolvable:$true] %s120_s19 }
  0x87   :  { %s2881_s6 = scalar_lea.hbm %s3669_s7, 32 }
  0x88   :  { %p2882_p11 = scmp.ne.s32.totalorder %s3669_s7, %s2881_s6  ;;  %p2885_p12 = scmp.lt.u32.totalorder %s2881_s6, %s3669_s7 }
  0x8a   :  { %p2887_p13 = pnand %p2885_p12, %p2882_p11 }
  0x8c   :  { %2890 = shalt.err (!%p2887_p13)
}
  0x8d   :  { %s2891_s4 = scalar_lea.vmem %s97_s24, 32  ;;  %p2896_p1 = scmp.lt.s32.totalorder %s97_s24, %s97_s24 }
  0x8e   :  { %p2892_p0 = scmp.ne.s32.totalorder %s97_s24, %s2891_s4  ;;  %p2897_p2 = scmp.lt.s32.totalorder %s2891_s4, %s2891_s4 }
  0x90   :  { %p2898_p3 = por %p2897_p2, %p2896_p1 }
  0x92   :  { %p2899_p4 = pnand %p2898_p3, %p2892_p0 }
  0x94   :  { %2902 = shalt.err (!%p2899_p4)
}
  0x95   :  { %102 = dma.hbm_to_vmem [thread:$0]  %s3669_s7, 32, %s97_s24, [#allocation12], %s3034_s0, %s3034_s0, %s3035_s23  }
  0x96   :  { %s2903_s22 = scalar_lea.hbm %s3671_s9, 512 }
  0x97   :  { %p2904_p5 = scmp.ne.s32.totalorder %s3671_s9, %s2903_s22  ;;  %p2907_p6 = scmp.lt.u32.totalorder %s2903_s22, %s3671_s9 }
  0x99   :  { %p2909_p7 = pnand %p2907_p6, %p2904_p5 }
  0x9b   :  { %2912 = shalt.err (!%p2909_p7)
}
  0x9c   :  { %s2913_s8 = scalar_lea.vmem %s121_s19, 512  ;;  %p2918_p9 = scmp.lt.s32.totalorder %s121_s19, %s121_s19 }
  0x9d   :  { %p2914_p8 = scmp.ne.s32.totalorder %s121_s19, %s2913_s8  ;;  %p2919_p10 = scmp.lt.s32.totalorder %s2913_s8, %s2913_s8 }
  0x9f   :  { %p2920_p11 = por %p2919_p10, %p2918_p9 }
  0xa1   :  { %p2921_p12 = pnand %p2920_p11, %p2914_p8 }
  0xa3   :  { %2924 = shalt.err (!%p2921_p12)
}
  0xa4   :  { %s3042_s7 = smov 64   ;;  %s3043_s24 = smov 4  }
  0xa5   :  { %126 = dma.hbm_to_vmem [thread:$0]  %s3671_s9, 512, %s121_s19, [#allocation15], %s3042_s7, %s3042_s7, %s3043_s24  }
  0xa6   :  { %s3044_s26 = smov [#allocation19]   ;;  %s3045_s18 = smov [#allocation20]  }
  0xa7   :  { %s146_s17 = sshll.u32 %s3044_s26, 4  ;;  %s158_s25 = sshll.u32 %s3045_s18, 4  ;;  %s147_s17 = int_to_ptr.vmem [resolvable:$true] %s146_s17  ;;  %s159_s25 = int_to_ptr.vmem [resolvable:$true] %s158_s25 }
  0xa8   :  { %s2925_s30 = scalar_lea.hbm %s3674_s12, 32 }
  0xa9   :  { %p2926_p13 = scmp.ne.s32.totalorder %s3674_s12, %s2925_s30  ;;  %p2929_p0 = scmp.lt.u32.totalorder %s2925_s30, %s3674_s12 }
  0xab   :  { %p2931_p1 = pnand %p2929_p0, %p2926_p13 }
  0xad   :  { %2934 = shalt.err (!%p2931_p1)
}
  0xae   :  { %s2935_s9 = scalar_lea.vmem %s147_s17, 32  ;;  %p2940_p3 = scmp.lt.s32.totalorder %s147_s17, %s147_s17 }
  0xaf   :  { %p2936_p2 = scmp.ne.s32.totalorder %s147_s17, %s2935_s9  ;;  %p2941_p4 = scmp.lt.s32.totalorder %s2935_s9, %s2935_s9 }
  0xb1   :  { %p2942_p5 = por %p2941_p4, %p2940_p3 }
  0xb3   :  { %p2943_p6 = pnand %p2942_p5, %p2936_p2 }
  0xb5   :  { %2946 = shalt.err (!%p2943_p6)
}
  0xb6   :  { %152 = dma.hbm_to_vmem [thread:$0]  %s3674_s12, 32, %s147_s17, [#allocation18], %s3034_s0, %s3034_s0, %s3035_s23  }
  0xb7   :  { %s2947_s8 = scalar_lea.hbm %s3675_s13, 32 }
  0xb8   :  { %p2948_p7 = scmp.ne.s32.totalorder %s3675_s13, %s2947_s8  ;;  %p2951_p8 = scmp.lt.u32.totalorder %s2947_s8, %s3675_s13 }
  0xba   :  { %p2953_p9 = pnand %p2951_p8, %p2948_p7 }
  0xbc   :  { %2956 = shalt.err (!%p2953_p9)
}
  0xbd   :  { %s2957_s18 = scalar_lea.vmem %s159_s25, 32  ;;  %p2962_p11 = scmp.lt.s32.totalorder %s159_s25, %s159_s25 }
  0xbe   :  { %p2958_p10 = scmp.ne.s32.totalorder %s159_s25, %s2957_s18  ;;  %p2963_p12 = scmp.lt.s32.totalorder %s2957_s18, %s2957_s18 }
  0xc0   :  { %p2964_p13 = por %p2963_p12, %p2962_p11 }
  0xc2   :  { %p2965_p0 = pnand %p2964_p13, %p2958_p10 }
  0xc4   :  { %2968 = shalt.err (!%p2965_p0)
}
  0xc5   :  { %164 = dma.hbm_to_vmem [thread:$0]  %s3675_s13, 32, %s159_s25, [#allocation21], %s3034_s0, %s3034_s0, %s3035_s23  }
  0xc6   :  { %3013 = dma.done.wait [#allocation6], 16  }
  0xc7   :  { %3014 = vsyncadd [#allocation6], 4294967280 }
  0xc8   :  { %3015 = dma.done.wait [#allocation4], 16  }
  0xc9   :  { %3016 = vsyncadd [#allocation4], 4294967280 }
  0xca   :  { %3017 = dma.done.wait [#allocation9], 160  }
  0xcb   :  { %3018 = vsyncadd [#allocation9], 4294967136 }
  0xcc   :  { %3019 = dma.done.wait [#allocation12], 64  }
  0xcd   :  { %3020 = vsyncadd [#allocation12], 4294967232 }
  0xce   :  { %3021 = dma.done.wait [#allocation15], 544  }
  0xcf   :  { %3022 = vsyncadd [#allocation15], 4294966752 }
  0xd0   :  { %3023 = dma.done.wait [#allocation18], 64  }
  0xd1   :  { %3024 = vsyncadd [#allocation18], 4294967232 }
  0xd2   :  { %3025 = dma.done.wait [#allocation21], 32  }
  0xd3   :  { %3026 = vsyncadd [#allocation21], 4294967264 }
  0xd4   :  { %204 = sfence }
  0xd5   :  { %v2667_v0 = vld [vmem:[%s3665_s3] sm:$0xff]   ;;  %v3046_v1 = vmov 0.0   ;;  %v2668_v2 = vld [vmem:[%s3665_s3 + $0x8] sm:$0xff]   ;;  %vm3047_vm0 = vmmov 0   ;;  %vm232_vm1 = vcmask 261120   ;;  %s3048_s23 = smov 120  }
  0xd6   :  { %2429 = vmatprep.subr.bf16.mxu0 %v3046_v1  ;;  %2437 = vmatprep.subr.bf16.mxu1 %v3046_v1  ;;  %v3312_v3 = vld [vmem:[#allocation8] sm:$0xff]  ;;  %v2271_v5 = vld [vmem:[#allocation10] ss:$0 sm:$0xff]  ;;  %s3049_s25 = smov 96   ;;  %s3050_s30 = smov 88   ;;  %vm284_vm2 = vcmask 64512  }
  0xd7   :  { %2430 = vmatpush3.bf16.msra.mxu0 %v2667_v0  ;;  %2433 = vmatprep.mubr.msk.bf16.mxu0 %vm3047_vm0, %v3046_v1  ;;  %v208_v4 = vpack.c.bf16 %v3312_v3, %v3312_v3  ;;  %v3342_v18 = vld [vmem:[#allocation7] ss:$0 sm:$0xff]  ;;  %s3051_s1 = smov 56   ;;  %s3052_s21 = smov 112   ;;  %vm356_vm3 = vcmask 1043456   ;;  %v276_v54 = vld [vmem:[%s3667_s5] sm:$0xff] }
  0xd8   :  { %2431 = vmatprep.subr.bf16.mxu0 %v3046_v1  ;;  %2439 = vmatprep.mubr.msk.bf16.mxu1 %vm3047_vm0, %v3046_v1  ;;  %s3053_s22 = smov 80   ;;  %v400_v55 = vpack.c.bf16 %v276_v54, %v276_v54  ;;  %v277_v56 = vld [vmem:[%s3667_s5 + $0x8] sm:$0xff]  ;;  %s3054_s10 = smov 72   ;;  %vm1104_vm5 = vcmask 523264  }
  0xd9   :  { %v514_v58 = vpack.c.bf16 %v277_v56, %v277_v56  ;;  %s3055_s2 = smov 104   ;;  %s3056_s8 = smov 48  }
  0xda   :  { %v566_v57 = vsel %vm356_vm3, %v400_v55, 0  ;;  %s3057_s6 = smov 40   ;;  %s2226_s20 = sld [smem:[#allocation3]] }
  0xdb   :  { %2432 = vmatpush3.bf16.msra.mxu0 %v2668_v2  ;;  %v520_v59 = vsel %vm356_vm3, %v514_v58, 0  ;;  %s2355_s24 = sld [smem:[#allocation3 + $0x1]] }
  0xdc   :  { %2443 = vmatprep.subr.bf16.mxu0 %v3046_v1 }
  0xde   :  { %2434 = vmatmul.mubr.msk.bf16.vlgmr.msra.gmra.mrb[0].mxu0 %vm232_vm1, %v208_v4 }
  0xdf   :  { %2445 = vmatprep.mubr.msk.bf16.mxu0 %vm3047_vm0, %v3046_v1 }
  0xe0   :  { %s2227_s29 = scalar_lea.vmem [#allocation2], %s2226_s20 }
 0x1b1   :  { %v270_v6 = vpop.f32.mrb[0].mxu0 }
 0x1b2   :  { %v271_v7 = vadd.f32 %v2271_v5, %v270_v6  ;;  %v2435_v8 = vpop.f32.mrb[1].mxu0 }
 0x1b3   :  { %v273_v9 = vpop.f32.mrb[2].mxu0 }
 0x1b4   :  { %v3323_v10 = vpack.c.bf16 %v271_v7, %v271_v7  ;;  %v2436_v11 = vpop.f32.mrb[3].mxu0 }
 0x1b6   :  { %402 = vrot.lane.b32.xlu1 %v3323_v10, %s3048_s23  ;;  %282 = vrot.lane.b32.xlu0 %v3323_v10, %s3049_s25 }
 0x1ba   :  { %404 = vrot.lane.b32.xlu0 %v3323_v10, %s3050_s30 }
 0x228   :  { %v283_v12 = vpop.permute.xlu0 %282  ;;  %v403_v16 = vpop.permute.xlu1 %402 }
 0x229   :  { %v289_v13 = vsel %vm284_vm2, %v283_v12, 0 }
 0x22a   :  { %2438 = vmatpush3.bf16.xpose.msra.mxu1 %v289_v13 }
 0x22b   :  { %2449 = vmatprep.subr.bf16.mxu1 %v3046_v1 }
 0x22c   :  { %v405_v14 = vpop.permute.xlu0 %404 }
 0x22d   :  { %v410_v15 = vsel %vm284_vm2, %v405_v14, 0 }
 0x231   :  { %2440 = vmatmul.mubr.msk.bf16.vlgmr.msra.gmra.mrb[0].mxu1 %vm284_vm2, %v3323_v10 }
 0x232   :  { %2450 = vmatpush3.bf16.xpose.msra.mxu1 %v410_v15  ;;  %2451 = vmatprep.mubr.msk.bf16.mxu1 %vm3047_vm0, %v3046_v1 }
 0x233   :  { %2461 = vmatprep.subr.bf16.mxu1 %v3046_v1 }
 0x239   :  { %2452 = vmatmul.mubr.msk.bf16.vlgmr.msra.gmra.mrb[4].mxu1 %vm284_vm2, %v403_v16 }
 0x23a   :  { %2463 = vmatprep.mubr.msk.bf16.mxu1 %vm3047_vm0, %v3046_v1  ;;  %2462 = vmatpush3.bf16.msra.mxu1 %v520_v59 }
 0x23b   :  { %2473 = vmatprep.subr.bf16.mxu1 %v3046_v1 }
 0x304   :  { %v325_v17 = vpop.f32.mrb[0].mxu1 }
 0x305   :  { %v331_v19 = vmul.f32 0.35355338, %v325_v17  ;;  %v2441_v20 = vpop.f32.mrb[1].mxu1 }
 0x306   :  { %v328_v21 = vpop.f32.mrb[2].mxu1 }
 0x307   :  { %v2442_v22 = vpop.f32.mrb[3].mxu1  ;;  %v338_v23 = vadd.f32 %v3342_v18, %v331_v19 }
 0x309   :  { %v339_v24 = vsel %vm284_vm2, %v338_v23, -inf }
 0x30a   :  { %340 = vmax.xlane.f32.xlu1 %v339_v24 }
 0x30c   :  { %v446_v25 = vpop.f32.mrb[4].mxu1 }
 0x30d   :  { %v452_v26 = vmul.f32 0.35355338, %v446_v25  ;;  %v2453_v27 = vpop.f32.mrb[5].mxu1 }
 0x30e   :  { %v449_v28 = vpop.f32.mrb[6].mxu1 }
 0x30f   :  { %v2454_v29 = vpop.f32.mrb[7].mxu1  ;;  %v453_v30 = vadd.f32 %v3342_v18, %v452_v26 }
 0x311   :  { %v454_v31 = vsel %vm284_vm2, %v453_v30, -inf }
 0x312   :  { %455 = vmax.xlane.f32.xlu0 %v454_v31 }
 0x397   :  { %v341_v32 = vpop.xlane.xlu1 %340 }
 0x398   :  { %v342_v33 = vsub.f32 %v338_v23, %v341_v32 }
 0x39a   :  { %v343_v34 = vmul.f32 1.442695, %v342_v33 }
 0x39c   :  { %2685 = vpow2.f32 %v343_v34 }
 0x39f   :  { %v456_v35 = vpop.xlane.xlu0 %455 }
 0x3a0   :  { %v457_v36 = vsub.f32 %v453_v30, %v456_v35 }
 0x3a2   :  { %v458_v37 = vmul.f32 1.442695, %v457_v36 }
 0x3a4   :  { %2687 = vpow2.f32 %v458_v37 }
 0x3a6   :  { %v2686_v38 = vpop.eup %2685 }
 0x3a7   :  { %v345_v39 = vsel %vm284_vm2, %v2686_v38, 0.0 }
 0x3a8   :  { %346 = vadd.xlane.f32.xlu0 %v345_v39 }
 0x3ae   :  { %v2688_v40 = vpop.eup %2687 }
 0x3af   :  { %v460_v41 = vsel %vm284_vm2, %v2688_v40, 0.0 }
 0x3b0   :  { %461 = vadd.xlane.f32.xlu1 %v460_v41 }
 0x3be   :  { %351 = vrot.lane.b32.xlu0 %v3323_v10, %s3042_s7 }
 0x3c1   :  { %466 = vrot.lane.b32.xlu1 %v3323_v10, %s3051_s1 }
 0x3c2   :  { %608 = vrot.lane.b32.xlu0 %v3323_v10, %s3052_s21 }
 0x3c5   :  { %610 = vrot.lane.b32.xlu1 %v3323_v10, %s3053_s22 }
 0x435   :  { %v347_v42 = vpop.xlane.xlu0 %346 }
 0x436   :  { %2689 = vrcp.f32 %v347_v42 }
 0x439   :  { %v352_v43 = vpop.permute.xlu0 %351 }
 0x43a   :  { %v358_v44 = vsel %vm356_vm3, %v352_v43, 0  ;;  %v278_v43 = vld [vmem:[%s3667_s5 + $0x10] sm:$0xff] }
 0x43b   :  { %2444 = vmatpush3.bf16.msra.mxu0 %v358_v44  ;;  %v720_v44 = vpack.c.bf16 %v278_v43, %v278_v43 }
 0x43c   :  { %2455 = vmatprep.subr.bf16.mxu0 %v3046_v1 }
 0x43d   :  { %v462_v45 = vpop.xlane.xlu1 %461  ;;  %v609_v11 = vpop.permute.xlu0 %608 }
 0x43e   :  { %2691 = vrcp.f32 %v462_v45  ;;  %v726_v45 = vsel %vm356_vm3, %v720_v44, 0 }
 0x440   :  { %v2690_v46 = vpop.eup %2689 }
 0x441   :  { %v349_v47 = vmul.f32 %v2690_v46, %v2686_v38  ;;  %v467_v48 = vpop.permute.xlu1 %466 }
 0x442   :  { %v472_v50 = vsel %vm356_vm3, %v467_v48, 0 }
 0x443   :  { %v350_v49 = vpack.c.bf16 %v349_v47, %v349_v47 }
 0x445   :  { %2446 = vmatmul.mubr.msk.bf16.vlgmr.msra.gmra.mrb[4].mxu0 %vm284_vm2, %v350_v49  ;;  %v611_v2 = vpop.permute.xlu1 %610 }
 0x446   :  { %2456 = vmatpush3.bf16.msra.mxu0 %v472_v50  ;;  %2457 = vmatprep.mubr.msk.bf16.mxu0 %vm3047_vm0, %v3046_v1  ;;  %v616_v8 = vsel %vm284_vm2, %v611_v2, 0 }
 0x447   :  { %2467 = vmatprep.subr.bf16.mxu0 %v3046_v1 }
 0x448   :  { %v2692_v51 = vpop.eup %2691 }
 0x449   :  { %v464_v52 = vmul.f32 %v2692_v51, %v2688_v40 }
 0x44b   :  { %v465_v53 = vpack.c.bf16 %v464_v52, %v464_v52 }
 0x44d   :  { %2458 = vmatmul.mubr.msk.bf16.vlgmr.msra.gmra.mrb[8].mxu0 %vm284_vm2, %v465_v53 }
 0x44e   :  { %2469 = vmatprep.mubr.msk.bf16.mxu0 %vm3047_vm0, %v3046_v1  ;;  %2468 = vmatpush3.bf16.msra.mxu0 %v566_v57 }
 0x44f   :  { %2479 = vmatprep.subr.bf16.mxu0 %v3046_v1 }
 0x518   :  { %v394_v60 = vpop.f32.mrb[4].mxu0 }
 0x519   :  { %v401_v61 = vpack.c.bf16 %v394_v60, %v394_v60  ;;  %v2447_v62 = vpop.f32.mrb[5].mxu0 }
 0x51a   :  { %v397_v63 = vpop.f32.mrb[6].mxu0 }
 0x51b   :  { %v2448_v0 = vpop.f32.mrb[7].mxu0  ;;  %2470 = vmatmul.mubr.msk.bf16.vlgmr.msra.gmra.mrb[12].mxu0 %vm284_vm2, %v401_v61 }
 0x51c   :  { %2481 = vmatprep.mubr.msk.bf16.mxu0 %vm3047_vm0, %v3046_v1 }
 0x520   :  { %v508_v4 = vpop.f32.mrb[8].mxu0 }
 0x521   :  { %v515_v5 = vpack.c.bf16 %v508_v4, %v508_v4  ;;  %v2459_v6 = vpop.f32.mrb[9].mxu0 }
 0x522   :  { %v511_v7 = vpop.f32.mrb[10].mxu0 }
 0x523   :  { %v2460_v9 = vpop.f32.mrb[11].mxu0  ;;  %2464 = vmatmul.mubr.msk.bf16.vlgmr.msra.gmra.mrb[8].mxu1 %vm284_vm2, %v515_v5 }
 0x524   :  { %2474 = vmatpush3.bf16.xpose.msra.mxu1 %v616_v8  ;;  %2475 = vmatprep.mubr.msk.bf16.mxu1 %vm3047_vm0, %v3046_v1 }
 0x525   :  { %2485 = vmatprep.subr.bf16.mxu1 %v3046_v1 }
 0x52b   :  { %2476 = vmatmul.mubr.msk.bf16.vlgmr.msra.gmra.mrb[12].mxu1 %vm284_vm2, %v609_v11 }
 0x52c   :  { %2487 = vmatprep.mubr.msk.bf16.mxu1 %vm3047_vm0, %v3046_v1  ;;  %2486 = vmatpush3.bf16.msra.mxu1 %v726_v45 }
 0x52d   :  { %2497 = vmatprep.subr.bf16.mxu1 %v3046_v1 }
 0x5ee   :  { %v602_v12 = vpop.f32.mrb[12].mxu0 }
 0x5ef   :  { %v2471_v13 = vpop.f32.mrb[13].mxu0 }
 0x5f0   :  { %v605_v14 = vpop.f32.mrb[14].mxu0 }
 0x5f1   :  { %v2472_v15 = vpop.f32.mrb[15].mxu0 }
 0x5f6   :  { %v556_v16 = vpop.f32.mrb[8].mxu1 }
 0x5f7   :  { %v3389_v17 = vadd.f32 %v602_v12, %v556_v16  ;;  %v2465_v19 = vpop.f32.mrb[9].mxu1  ;;  %v279_v12 = vld [vmem:[%s3667_s5 + $0x18] sm:$0xff] }
 0x5f8   :  { %v559_v20 = vpop.f32.mrb[10].mxu1  ;;  %v881_v13 = vpack.c.bf16 %v279_v12, %v279_v12 }
 0x5f9   :  { %v2466_v21 = vpop.f32.mrb[11].mxu1 }
 0x5fa   :  { %v887_v14 = vsel %vm356_vm3, %v881_v13, 0 }
 0x5fe   :  { %v652_v22 = vpop.f32.mrb[12].mxu1 }
 0x5ff   :  { %v658_v23 = vmul.f32 0.35355338, %v652_v22  ;;  %v2477_v24 = vpop.f32.mrb[13].mxu1  ;;  %v2288_v22 = vld [vmem:[#allocation11] ss:$0 sm:$0xff] }
 0x600   :  { %v655_v25 = vpop.f32.mrb[14].mxu1 }
 0x601   :  { %v2478_v26 = vpop.f32.mrb[15].mxu1  ;;  %v659_v27 = vadd.f32 %v3342_v18, %v658_v23 }
 0x603   :  { %v660_v28 = vsel %vm284_vm2, %v659_v27, -inf }
 0x604   :  { %661 = vmax.xlane.f32.xlu1 %v660_v28 }
 0x615   :  { %771 = vrot.lane.b32.xlu1 %v3323_v10, %s3054_s10 }
 0x619   :  { %769 = vrot.lane.b32.xlu1 %v3323_v10, %s3055_s2 }
 0x691   :  { %v662_v29 = vpop.xlane.xlu1 %661 }
 0x692   :  { %v663_v30 = vsub.f32 %v659_v27, %v662_v29 }
 0x694   :  { %v664_v31 = vmul.f32 1.442695, %v663_v30 }
 0x695   :  { %v772_v39 = vpop.permute.xlu1 %771 }
 0x696   :  { %2693 = vpow2.f32 %v664_v31  ;;  %v777_v41 = vsel %vm284_vm2, %v772_v39, 0 }
 0x699   :  { %v770_v42 = vpop.permute.xlu1 %769 }
 0x6a0   :  { %v2694_v32 = vpop.eup %2693 }
 0x6a1   :  { %v666_v33 = vsel %vm284_vm2, %v2694_v32, 0.0 }
 0x6a2   :  { %667 = vadd.xlane.f32.xlu0 %v666_v33 }
 0x6b8   :  { %672 = vrot.lane.b32.xlu0 %v3323_v10, %s3056_s8 }
 0x72f   :  { %v668_v34 = vpop.xlane.xlu0 %667 }
 0x730   :  { %2695 = vrcp.f32 %v668_v34 }
 0x733   :  { %v673_v35 = vpop.permute.xlu0 %672 }
 0x734   :  { %v678_v36 = vsel %vm356_vm3, %v673_v35, 0  ;;  %v2669_v35 = vld [vmem:[#allocation16] sm:$0xff]  }
 0x735   :  { %2480 = vmatpush3.bf16.msra.mxu0 %v678_v36  ;;  %v2670_v36 = vld [vmem:[#allocation16 + $0x8] sm:$0xff]  }
 0x736   :  { %2491 = vmatprep.subr.bf16.mxu0 %v3046_v1 }
 0x73a   :  { %v2696_v37 = vpop.eup %2695 }
 0x73b   :  { %v670_v38 = vmul.f32 %v2696_v37, %v2694_v32 }
 0x73d   :  { %v671_v40 = vpack.c.bf16 %v670_v38, %v670_v38 }
 0x73f   :  { %2482 = vmatmul.mubr.msk.bf16.vlgmr.msra.gmra.mrb[16].mxu0 %vm284_vm2, %v671_v40  ;;  %v2289_v40 = vld [vmem:[#allocation13] ss:$0 sm:$0xff] }
 0x740   :  { %2492 = vmatpush3.bf16.xpose.msra.mxu0 %v777_v41  ;;  %2493 = vmatprep.mubr.msk.bf16.mxu0 %vm3047_vm0, %v3046_v1 }
 0x741   :  { %2503 = vmatprep.subr.bf16.mxu0 %v3046_v1 }
 0x747   :  { %2494 = vmatmul.mubr.msk.bf16.vlgmr.msra.gmra.mrb[20].mxu0 %vm284_vm2, %v770_v42  ;;  %v2290_v42 = vld [vmem:[#allocation14] ss:$0 sm:$0xff] }
 0x748   :  { %2505 = vmatprep.mubr.msk.bf16.mxu0 %vm3047_vm0, %v3046_v1  ;;  %2504 = vmatpush3.bf16.msra.mxu0 %v887_v14  ;;  %v3058_v14 = vmov -1.0  }
 0x749   :  { %2517 = vmatprep.subr.bf16.mxu0 %v3046_v1 }
 0x812   :  { %v714_v46 = vpop.f32.mrb[16].mxu0 }
 0x813   :  { %v721_v47 = vpack.c.bf16 %v714_v46, %v714_v46  ;;  %v2483_v48 = vpop.f32.mrb[17].mxu0  ;;  %v2671_v46 = vld [vmem:[%s3673_s11] sm:$0xff]  }
 0x814   :  { %v717_v49 = vpop.f32.mrb[18].mxu0  ;;  %v2673_v48 = vld [vmem:[%s3673_s11 + $0x10] sm:$0xff]  }
 0x815   :  { %v2484_v50 = vpop.f32.mrb[19].mxu0  ;;  %2488 = vmatmul.mubr.msk.bf16.vlgmr.msra.gmra.mrb[16].mxu1 %vm284_vm2, %v721_v47  ;;  %v2672_v47 = vld [vmem:[%s3673_s11 + $0x8] sm:$0xff]   ;;  %v2674_v49 = vld [vmem:[%s3673_s11 + $0x18] sm:$0xff]  }
 0x816   :  { %2499 = vmatprep.mubr.msk.bf16.mxu1 %vm3047_vm0, %v3046_v1  ;;  %v2291_v50 = vld [vmem:[#allocation17] ss:$0 sm:$0xff] }
 0x81a   :  { %v813_v51 = vpop.f32.mrb[20].mxu0 }
 0x81b   :  { %v819_v52 = vmul.f32 0.35355338, %v813_v51  ;;  %v2495_v53 = vpop.f32.mrb[21].mxu0 }
 0x81c   :  { %v816_v54 = vpop.f32.mrb[22].mxu0 }
 0x81d   :  { %v2496_v55 = vpop.f32.mrb[23].mxu0  ;;  %v820_v56 = vadd.f32 %v3342_v18, %v819_v52 }
 0x81f   :  { %v821_v57 = vsel %vm284_vm2, %v820_v56, -inf }
 0x820   :  { %822 = vmax.xlane.f32.xlu0 %v821_v57 }
 0x836   :  { %833 = vrot.lane.b32.xlu0 %v3323_v10, %s3057_s6 }
 0x8ad   :  { %v823_v58 = vpop.xlane.xlu0 %822 }
 0x8ae   :  { %v824_v59 = vsub.f32 %v820_v56, %v823_v58 }
 0x8b0   :  { %v825_v60 = vmul.f32 1.442695, %v824_v59 }
 0x8b1   :  { %v834_v61 = vpop.permute.xlu0 %833 }
 0x8b2   :  { %2697 = vpow2.f32 %v825_v60  ;;  %v839_v62 = vsel %vm356_vm3, %v834_v61, 0 }
 0x8b3   :  { %2498 = vmatpush3.bf16.msra.mxu1 %v839_v62 }
 0x8b4   :  { %2509 = vmatprep.subr.bf16.mxu1 %v3046_v1 }
 0x8bc   :  { %v2698_v63 = vpop.eup %2697 }
 0x8bd   :  { %v827_v0 = vsel %vm284_vm2, %v2698_v63, 0.0 }
 0x8be   :  { %828 = vadd.xlane.f32.xlu1 %v827_v0 }
 0x8e8   :  { %v762_v2 = vpop.f32.mrb[16].mxu1 }
 0x8e9   :  { %v768_v4 = vadd.f32 %v762_v2, %v3389_v17  ;;  %v2489_v5 = vpop.f32.mrb[17].mxu1 }
 0x8ea   :  { %v765_v6 = vpop.f32.mrb[18].mxu1 }
 0x8eb   :  { %v2490_v10 = vpop.f32.mrb[19].mxu1 }
 0x94b   :  { %v829_v7 = vpop.xlane.xlu1 %828 }
 0x94c   :  { %2699 = vrcp.f32 %v829_v7 }
 0x956   :  { %v2700_v8 = vpop.eup %2699 }
 0x957   :  { %v831_v9 = vmul.f32 %v2700_v8, %v2698_v63 }
 0x959   :  { %v832_v11 = vpack.c.bf16 %v831_v9, %v831_v9 }
 0x95b   :  { %2500 = vmatmul.mubr.msk.bf16.vlgmr.msra.gmra.mrb[20].mxu1 %vm284_vm2, %v832_v11 }
 0x95c   :  { %2513 = vmatprep.mubr.msk.bf16.mxu1 %vm3047_vm0, %v3046_v1  ;;  %2510 = vmatpush3.bf16.msra.mxu1 %v2669_v35  ;;  %v2675_v35 = vld [vmem:[%s3665_s3 + $0x10] sm:$0xff]  }
 0x95d   :  { %2511 = vmatprep.subr.bf16.mxu1 %v3046_v1 }
 0x960   :  { %2512 = vmatpush3.bf16.msra.mxu1 %v2670_v36  ;;  %v2676_v36 = vld [vmem:[%s3665_s3 + $0x18] sm:$0xff]  }
 0x961   :  { %2529 = vmatprep.subr.bf16.mxu1 %v3046_v1 }
 0xa2e   :  { %v875_v15 = vpop.f32.mrb[20].mxu1 }
 0xa2f   :  { %v882_v16 = vpack.c.bf16 %v875_v15, %v875_v15  ;;  %v2501_v17 = vpop.f32.mrb[21].mxu1 }
 0xa30   :  { %v878_v19 = vpop.f32.mrb[22].mxu1 }
 0xa31   :  { %v2502_v20 = vpop.f32.mrb[23].mxu1  ;;  %2506 = vmatmul.mubr.msk.bf16.vlgmr.msra.gmra.mrb[24].mxu0 %vm284_vm2, %v882_v16 }
 0xa32   :  { %2525 = vmatprep.mubr.msk.bf16.mxu0 %vm3047_vm0, %v3046_v1  ;;  %2518 = vmatpush3.bf16.msra.mxu0 %v2671_v46  ;;  %v2307_v46 = vld [vmem:[#allocation10 + $0x1] ss:$0 sm:$0xff] }
 0xa33   :  { %2519 = vmatprep.subr.bf16.mxu0 %v3046_v1 }
 0xa36   :  { %2520 = vmatpush3.bf16.msra.mxu0 %v2672_v47 }
 0xa37   :  { %2521 = vmatprep.subr.bf16.mxu0 %v3046_v1 }
 0xa3a   :  { %2522 = vmatpush3.bf16.msra.mxu0 %v2673_v48 }
 0xa3b   :  { %2523 = vmatprep.subr.bf16.mxu0 %v3046_v1 }
 0xa3e   :  { %2524 = vmatpush3.bf16.msra.mxu0 %v2674_v49 }
 0xa3f   :  { %2543 = vmatprep.subr.bf16.mxu0 %v3046_v1 }
 0xb04   :  { %v923_v21 = vpop.f32.mrb[24].mxu0 }
 0xb05   :  { %v929_v23 = vadd.f32 %v923_v21, %v768_v4  ;;  %v2507_v24 = vpop.f32.mrb[25].mxu0 }
 0xb06   :  { %v926_v25 = vpop.f32.mrb[26].mxu0 }
 0xb07   :  { %v937_v26 = vadd.f32 %v2288_v22, %v929_v23  ;;  %v2508_v27 = vpop.f32.mrb[27].mxu0  ;;  %v2295_v22 = vld [vmem:[#allocation19] ss:$0 sm:$0xff] }
 0xb09   :  { %v938_v28 = vadd.f32 %v937_v26, %v3312_v3 }
 0xb0b   :  { %v941_v29 = vsel %vm232_vm1, %v938_v28, 0.0 }
 0xb0c   :  { %942 = vadd.xlane.f32.xlu1 %v941_v29 }
 0xb99   :  { %v943_v30 = vpop.xlane.xlu1 %942 }
 0xb9a   :  { %v945_v31 = vmul.f32 0.03125, %v943_v30 }
 0xb9c   :  { %v946_v32 = vsub.f32 %v938_v28, %v945_v31 }
 0xb9e   :  { %v947_v33 = vmul.f32 %v946_v32, %v946_v32 }
 0xba0   :  { %v948_v34 = vsel %vm232_vm1, %v947_v33, 0.0 }
 0xba1   :  { %949 = vadd.xlane.f32.xlu1 %v948_v34 }
 0xc2e   :  { %v950_v37 = vpop.xlane.xlu1 %949 }
 0xc2f   :  { %v951_v3 = vmul.f32 0.03125, %v950_v37 }
 0xc31   :  { %v952_v38 = vadd.f32 1e-05, %v951_v3 }
 0xc33   :  { %2701 = vrsqrt.f32 %v952_v38 }
 0xc3d   :  { %v2702_v39 = vpop.eup %2701 }
 0xc3e   :  { %v954_v41 = vmul.f32 %v2702_v39, %v946_v32 }
 0xc40   :  { %v961_v43 = vmul.f32 %v2289_v40, %v954_v41  ;;  %v2301_v40 = vld [vmem:[#allocation20] ss:$0 sm:$0xff] }
 0xc42   :  { %v968_v44 = vadd.f32 %v2290_v42, %v961_v43  ;;  %v2302_v42 = vld [vmem:[%s3676_s14] ss:$0 sm:$0xff] }
 0xc44   :  { %v969_v45 = vpack.c.bf16 %v968_v44, %v968_v44 }
 0xc46   :  { %2514 = vmatmul.mubr.msk.bf16.vlgmr.msra.gmra.mrb[24].mxu1 %vm232_vm1, %v969_v45 }
 0xc47   :  { %2533 = vmatprep.mubr.msk.bf16.mxu1 %vm3047_vm0, %v3046_v1  ;;  %2530 = vmatpush3.bf16.msra.mxu1 %v2675_v35 }
 0xc48   :  { %2531 = vmatprep.subr.bf16.mxu1 %v3046_v1 }
 0xc4b   :  { %2532 = vmatpush3.bf16.msra.mxu1 %v2676_v36  ;;  %v2312_v36 = vld [vmem:[%s3667_s5 + $0x28] sm:$0xff] }
 0xc4c   :  { %2537 = vmatprep.subr.bf16.mxu1 %v3046_v1 }
 0xd19   :  { %v1030_v51 = vpop.f32.mrb[24].mxu1 }
 0xd1a   :  { %v1031_v52 = vadd.f32 %v2291_v50, %v1030_v51  ;;  %v2515_v53 = vpop.f32.mrb[25].mxu1 }
 0xd1b   :  { %v1033_v54 = vpop.f32.mrb[26].mxu1 }
 0xd1c   :  { %v1038_v55 = vmul.f32 0.70710677, %v1031_v52  ;;  %v2516_v56 = vpop.f32.mrb[27].mxu1  ;;  %v1036_v17 = vmul.f32 0.5, %v1031_v52 }
 0xd1e   :  { %v1041_v57 = vand.u32 2147483647, %v1038_v55  ;;  %vm1039_vm4 = vcmp.ge.f32.partialorder %v1038_v55, 0.0 }
 0xd1f   :  { %v1040_v15 = vsel %vm1039_vm4, 1.0, %v3058_v14 }
 0xd20   :  { %v1042_v58 = vmul.f32 0.3275911, %v1041_v57  ;;  %v1055_v60 = vsub.f32 0.0, %v1041_v57 }
 0xd22   :  { %v1043_v59 = vadd.f32 1.0, %v1042_v58  ;;  %v1056_v62 = vmul.f32 %v1055_v60, %v1041_v57 }
 0xd24   :  { %2703 = vrcp.f32 %v1043_v59  ;;  %v1057_v2 = vmul.f32 1.442695, %v1056_v62 }
 0xd26   :  { %2705 = vpow2.f32 %v1057_v2 }
 0xd2e   :  { %v2704_v61 = vpop.eup %2703 }
 0xd2f   :  { %v1046_v63 = vmul.f32 1.0614054, %v2704_v61 }
 0xd30   :  { %v2706_v11 = vpop.eup %2705 }
 0xd31   :  { %v1047_v0 = vadd.f32 -1.4531521, %v1046_v63 }
 0xd33   :  { %v1048_v4 = vmul.f32 %v2704_v61, %v1047_v0 }
 0xd35   :  { %v1049_v5 = vadd.f32 1.4214138, %v1048_v4 }
 0xd37   :  { %v1050_v6 = vmul.f32 %v2704_v61, %v1049_v5 }
 0xd39   :  { %v1051_v10 = vadd.f32 -0.28449672, %v1050_v6 }
 0xd3b   :  { %v1052_v7 = vmul.f32 %v2704_v61, %v1051_v10 }
 0xd3d   :  { %v1053_v8 = vadd.f32 0.2548296, %v1052_v7 }
 0xd3f   :  { %v1054_v9 = vmul.f32 %v2704_v61, %v1053_v8 }
 0xd41   :  { %v1059_v12 = vmul.f32 %v2706_v11, %v1054_v9 }
 0xd43   :  { %v1060_v13 = vsub.f32 1.0, %v1059_v12 }
 0xd45   :  { %v1061_v16 = vmul.f32 %v1060_v13, %v1040_v15 }
 0xd47   :  { %v1062_v19 = vadd.f32 1.0, %v1061_v16 }
 0xd49   :  { %v1063_v20 = vmul.f32 %v1062_v19, %v1036_v17 }
 0xd4b   :  { %v1064_v21 = vpack.c.bf16 %v1063_v20, %v1063_v20 }
 0xd4d   :  { %2526 = vmatmul.mubr.msk.bf16.vlgmr.msra.gmra.mrb[28].mxu0 %vm1104_vm5, %v1064_v21 }
 0xd4e   :  { %2545 = vmatprep.mubr.msk.bf16.mxu0 %vm3047_vm0, %v3046_v1 }
 0xe20   :  { %v1142_v23 = vpop.f32.mrb[28].mxu0 }
 0xe21   :  { %v1143_v24 = vadd.f32 %v2295_v22, %v1142_v23  ;;  %v2527_v25 = vpop.f32.mrb[29].mxu0 }
 0xe22   :  { %v1145_v26 = vpop.f32.mrb[30].mxu0 }
 0xe23   :  { %v2528_v27 = vpop.f32.mrb[31].mxu0  ;;  %v1148_v28 = vadd.f32 %v1143_v24, %v968_v44 }
 0xe25   :  { %v1151_v29 = vsel %vm232_vm1, %v1148_v28, 0.0 }
 0xe26   :  { %1152 = vadd.xlane.f32.xlu1 %v1151_v29 }
 0xeb3   :  { %v1153_v30 = vpop.xlane.xlu1 %1152 }
 0xeb4   :  { %v1154_v31 = vmul.f32 0.03125, %v1153_v30 }
 0xeb6   :  { %v1155_v32 = vsub.f32 %v1148_v28, %v1154_v31 }
 0xeb8   :  { %v1156_v33 = vmul.f32 %v1155_v32, %v1155_v32 }
 0xeba   :  { %v1157_v34 = vsel %vm232_vm1, %v1156_v33, 0.0 }
 0xebb   :  { %1158 = vadd.xlane.f32.xlu1 %v1157_v34  ;;  %v2311_v34 = vld [vmem:[%s3667_s5 + $0x20] sm:$0xff] }
 0xebc   :  { %v1364_v35 = vpack.c.bf16 %v2311_v34, %v2311_v34 }
 0xf48   :  { %v1159_v37 = vpop.xlane.xlu1 %1158 }
 0xf49   :  { %v1160_v3 = vmul.f32 0.03125, %v1159_v37  ;;  %v1530_v37 = vsel %vm356_vm3, %v1364_v35, 0 }
 0xf4b   :  { %v1161_v38 = vadd.f32 1e-05, %v1160_v3  ;;  %v1478_v3 = vpack.c.bf16 %v2312_v36, %v2312_v36 }
 0xf4d   :  { %2707 = vrsqrt.f32 %v1161_v38  ;;  %v1484_v38 = vsel %vm356_vm3, %v1478_v3, 0 }
 0xf57   :  { %v2708_v39 = vpop.eup %2707 }
 0xf58   :  { %v1163_v41 = vmul.f32 %v2708_v39, %v1155_v32 }
 0xf5a   :  { %v1170_v43 = vmul.f32 %v2301_v40, %v1163_v41 }
 0xf5c   :  { %v3478_v44 = vadd.f32 %v2302_v42, %v1170_v43 }
 0xf5e   :  { %v1178_v45 = vpack.c.bf16 %v3478_v44, %v3478_v44 }
 0xf60   :  { %2534 = vmatmul.mubr.msk.bf16.vlgmr.msra.gmra.mrb[28].mxu1 %vm232_vm1, %v1178_v45 }
 0xf61   :  { %2539 = vmatprep.mubr.msk.bf16.mxu1 %vm3047_vm0, %v3046_v1 }
0x1033   :  { %v1241_v47 = vpop.f32.mrb[28].mxu1 }
0x1034   :  { %v1242_v48 = vadd.f32 %v2307_v46, %v1241_v47  ;;  %v2535_v49 = vpop.f32.mrb[29].mxu1 }
0x1035   :  { %v1244_v50 = vpop.f32.mrb[30].mxu1 }
0x1036   :  { %v3485_v51 = vpack.c.bf16 %v1242_v48, %v1242_v48  ;;  %v2536_v52 = vpop.f32.mrb[31].mxu1 }
0x1038   :  { %1368 = vrot.lane.b32.xlu0 %v3485_v51, %s3050_s30  ;;  %1254 = vrot.lane.b32.xlu1 %v3485_v51, %s3049_s25 }
0x103c   :  { %1366 = vrot.lane.b32.xlu0 %v3485_v51, %s3048_s23 }
0x10aa   :  { %v1255_v53 = vpop.permute.xlu1 %1254  ;;  %v1369_v55 = vpop.permute.xlu0 %1368 }
0x10ab   :  { %v1260_v54 = vsel %vm284_vm2, %v1255_v53, 0  ;;  %v1374_v56 = vsel %vm284_vm2, %v1369_v55, 0 }
0x10ac   :  { %2538 = vmatpush3.bf16.xpose.msra.mxu1 %v1260_v54 }
0x10ad   :  { %2549 = vmatprep.subr.bf16.mxu1 %v3046_v1 }
0x10ae   :  { %v1367_v57 = vpop.permute.xlu0 %1366 }
0x10b3   :  { %2540 = vmatmul.mubr.msk.bf16.vlgmr.msra.gmra.mrb[32].mxu1 %vm284_vm2, %v3485_v51 }
0x10b4   :  { %2550 = vmatpush3.bf16.xpose.msra.mxu1 %v1374_v56  ;;  %2551 = vmatprep.mubr.msk.bf16.mxu1 %vm3047_vm0, %v3046_v1 }
0x10b5   :  { %2561 = vmatprep.subr.bf16.mxu1 %v3046_v1 }
0x10bb   :  { %2552 = vmatmul.mubr.msk.bf16.vlgmr.msra.gmra.mrb[36].mxu1 %vm284_vm2, %v1367_v57 }
0x10bc   :  { %2563 = vmatprep.mubr.msk.bf16.mxu1 %vm3047_vm0, %v3046_v1  ;;  %2562 = vmatpush3.bf16.msra.mxu1 %v1484_v38 }
0x10bd   :  { %2573 = vmatprep.subr.bf16.mxu1 %v3046_v1 }
0x1186   :  { %v1296_v58 = vpop.f32.mrb[32].mxu1 }
0x1187   :  { %v1302_v59 = vmul.f32 0.35355338, %v1296_v58  ;;  %v2541_v60 = vpop.f32.mrb[33].mxu1 }
0x1188   :  { %v1299_v61 = vpop.f32.mrb[34].mxu1 }
0x1189   :  { %v2542_v62 = vpop.f32.mrb[35].mxu1  ;;  %v1303_v63 = vadd.f32 %v3342_v18, %v1302_v59 }
0x118b   :  { %v1304_v0 = vsel %vm284_vm2, %v1303_v63, -inf }
0x118c   :  { %1305 = vmax.xlane.f32.xlu0 %v1304_v0 }
0x118e   :  { %v1410_v2 = vpop.f32.mrb[36].mxu1 }
0x118f   :  { %v1416_v4 = vmul.f32 0.35355338, %v1410_v2  ;;  %v2553_v5 = vpop.f32.mrb[37].mxu1 }
0x1190   :  { %v1413_v6 = vpop.f32.mrb[38].mxu1 }
0x1191   :  { %v2554_v10 = vpop.f32.mrb[39].mxu1  ;;  %v1417_v7 = vadd.f32 %v3342_v18, %v1416_v4 }
0x1193   :  { %v1418_v8 = vsel %vm284_vm2, %v1417_v7, -inf }
0x1194   :  { %1419 = vmax.xlane.f32.xlu1 %v1418_v8 }
0x11a5   :  { %1430 = vrot.lane.b32.xlu1 %v3485_v51, %s3051_s1 }
0x11a9   :  { %1572 = vrot.lane.b32.xlu1 %v3485_v51, %s3052_s21 }
0x1219   :  { %v1306_v9 = vpop.xlane.xlu0 %1305 }
0x121a   :  { %v1307_v11 = vsub.f32 %v1303_v63, %v1306_v9 }
0x121c   :  { %v1308_v12 = vmul.f32 1.442695, %v1307_v11 }
0x121e   :  { %2709 = vpow2.f32 %v1308_v12 }
0x1221   :  { %v1420_v13 = vpop.xlane.xlu1 %1419 }
0x1222   :  { %v1421_v15 = vsub.f32 %v1417_v7, %v1420_v13 }
0x1224   :  { %v1422_v16 = vmul.f32 1.442695, %v1421_v15 }
0x1225   :  { %v1431_v28 = vpop.permute.xlu1 %1430 }
0x1226   :  { %2711 = vpow2.f32 %v1422_v16  ;;  %v1436_v30 = vsel %vm356_vm3, %v1431_v28, 0 }
0x1228   :  { %v2710_v17 = vpop.eup %2709 }
0x1229   :  { %v1310_v19 = vsel %vm284_vm2, %v2710_v17, 0.0  ;;  %v1573_v53 = vpop.permute.xlu1 %1572 }
0x122a   :  { %1311 = vadd.xlane.f32.xlu0 %v1310_v19 }
0x1230   :  { %v2712_v20 = vpop.eup %2711 }
0x1231   :  { %v1424_v21 = vsel %vm284_vm2, %v2712_v20, 0.0 }
0x1232   :  { %1425 = vadd.xlane.f32.xlu0 %v1424_v21 }
0x1248   :  { %1316 = vrot.lane.b32.xlu0 %v3485_v51, %s3042_s7 }
0x124c   :  { %1574 = vrot.lane.b32.xlu0 %v3485_v51, %s3053_s22 }
0x12b7   :  { %v1312_v22 = vpop.xlane.xlu0 %1311 }
0x12b8   :  { %2713 = vrcp.f32 %v1312_v22 }
0x12bf   :  { %v1426_v23 = vpop.xlane.xlu0 %1425 }
0x12c0   :  { %2715 = vrcp.f32 %v1426_v23 }
0x12c2   :  { %v2714_v24 = vpop.eup %2713 }
0x12c3   :  { %v1314_v25 = vmul.f32 %v2714_v24, %v2710_v17  ;;  %v1317_v26 = vpop.permute.xlu0 %1316  ;;  %v2313_v24 = vld [vmem:[%s3667_s5 + $0x30] sm:$0xff] }
0x12c4   :  { %v1322_v27 = vsel %vm356_vm3, %v1317_v26, 0 }
0x12c5   :  { %2544 = vmatpush3.bf16.msra.mxu0 %v1322_v27  ;;  %v1315_v29 = vpack.c.bf16 %v1314_v25, %v1314_v25  ;;  %v1684_v25 = vpack.c.bf16 %v2313_v24, %v2313_v24 }
0x12c6   :  { %2555 = vmatprep.subr.bf16.mxu0 %v3046_v1 }
0x12c7   :  { %v1575_v45 = vpop.permute.xlu0 %1574  ;;  %v1690_v26 = vsel %vm356_vm3, %v1684_v25, 0 }
0x12c8   :  { %2546 = vmatmul.mubr.msk.bf16.vlgmr.msra.gmra.mrb[32].mxu0 %vm284_vm2, %v1315_v29  ;;  %v1580_v50 = vsel %vm284_vm2, %v1575_v45, 0 }
0x12c9   :  { %2556 = vmatpush3.bf16.msra.mxu0 %v1436_v30  ;;  %2557 = vmatprep.mubr.msk.bf16.mxu0 %vm3047_vm0, %v3046_v1 }
0x12ca   :  { %v2716_v31 = vpop.eup %2715  ;;  %2567 = vmatprep.subr.bf16.mxu0 %v3046_v1 }
0x12cb   :  { %v1428_v32 = vmul.f32 %v2716_v31, %v2712_v20 }
0x12cd   :  { %v1429_v33 = vpack.c.bf16 %v1428_v32, %v1428_v32 }
0x12d0   :  { %2558 = vmatmul.mubr.msk.bf16.vlgmr.msra.gmra.mrb[36].mxu0 %vm284_vm2, %v1429_v33 }
0x12d1   :  { %2569 = vmatprep.mubr.msk.bf16.mxu0 %vm3047_vm0, %v3046_v1  ;;  %2568 = vmatpush3.bf16.msra.mxu0 %v1530_v37 }
0x12d2   :  { %2579 = vmatprep.subr.bf16.mxu0 %v3046_v1 }
0x139b   :  { %v1358_v39 = vpop.f32.mrb[32].mxu0 }
0x139c   :  { %v1365_v40 = vpack.c.bf16 %v1358_v39, %v1358_v39  ;;  %v2547_v41 = vpop.f32.mrb[33].mxu0 }
0x139d   :  { %v1361_v42 = vpop.f32.mrb[34].mxu0 }
0x139e   :  { %v2548_v43 = vpop.f32.mrb[35].mxu0  ;;  %2570 = vmatmul.mubr.msk.bf16.vlgmr.msra.gmra.mrb[40].mxu0 %vm284_vm2, %v1365_v40 }
0x139f   :  { %2581 = vmatprep.mubr.msk.bf16.mxu0 %vm3047_vm0, %v3046_v1 }
0x13a3   :  { %v1472_v46 = vpop.f32.mrb[36].mxu0 }
0x13a4   :  { %v1479_v47 = vpack.c.bf16 %v1472_v46, %v1472_v46  ;;  %v2559_v48 = vpop.f32.mrb[37].mxu0 }
0x13a5   :  { %v1475_v49 = vpop.f32.mrb[38].mxu0 }
0x13a6   :  { %v2560_v52 = vpop.f32.mrb[39].mxu0  ;;  %2564 = vmatmul.mubr.msk.bf16.vlgmr.msra.gmra.mrb[40].mxu1 %vm284_vm2, %v1479_v47 }
0x13a7   :  { %2574 = vmatpush3.bf16.xpose.msra.mxu1 %v1580_v50  ;;  %2575 = vmatprep.mubr.msk.bf16.mxu1 %vm3047_vm0, %v3046_v1 }
0x13a8   :  { %2585 = vmatprep.subr.bf16.mxu1 %v3046_v1 }
0x13ae   :  { %2576 = vmatmul.mubr.msk.bf16.vlgmr.msra.gmra.mrb[44].mxu1 %vm284_vm2, %v1573_v53 }
0x13af   :  { %2587 = vmatprep.mubr.msk.bf16.mxu1 %vm3047_vm0, %v3046_v1  ;;  %2586 = vmatpush3.bf16.msra.mxu1 %v1690_v26 }
0x13b0   :  { %2597 = vmatprep.subr.bf16.mxu1 %v3046_v1 }
0x1471   :  { %v1566_v54 = vpop.f32.mrb[40].mxu0 }
0x1472   :  { %v2571_v55 = vpop.f32.mrb[41].mxu0 }
0x1473   :  { %v1569_v56 = vpop.f32.mrb[42].mxu0 }
0x1474   :  { %v2572_v57 = vpop.f32.mrb[43].mxu0 }
0x1479   :  { %v1520_v58 = vpop.f32.mrb[40].mxu1 }
0x147a   :  { %v3549_v59 = vadd.f32 %v1566_v54, %v1520_v58  ;;  %v2565_v60 = vpop.f32.mrb[41].mxu1 }
0x147b   :  { %v1523_v61 = vpop.f32.mrb[42].mxu1 }
0x147c   :  { %v2566_v62 = vpop.f32.mrb[43].mxu1 }
0x1481   :  { %v1616_v63 = vpop.f32.mrb[44].mxu1 }
0x1482   :  { %v1622_v0 = vmul.f32 0.35355338, %v1616_v63  ;;  %v2577_v2 = vpop.f32.mrb[45].mxu1  ;;  %v2327_v63 = vld [vmem:[#allocation11 + $0x1] ss:$0 sm:$0xff] }
0x1483   :  { %v1619_v4 = vpop.f32.mrb[46].mxu1 }
0x1484   :  { %v2578_v5 = vpop.f32.mrb[47].mxu1  ;;  %v1623_v6 = vadd.f32 %v3342_v18, %v1622_v0 }
0x1486   :  { %v1624_v10 = vsel %vm284_vm2, %v1623_v6, -inf }
0x1487   :  { %1625 = vmax.xlane.f32.xlu0 %v1624_v10 }
0x149d   :  { %1636 = vrot.lane.b32.xlu0 %v3485_v51, %s3056_s8 }
0x14a1   :  { %1733 = vrot.lane.b32.xlu0 %v3485_v51, %s3055_s2 }
0x1514   :  { %v1626_v7 = vpop.xlane.xlu0 %1625 }
0x1515   :  { %v1627_v8 = vsub.f32 %v1623_v6, %v1626_v7 }
0x1517   :  { %v1628_v9 = vmul.f32 1.442695, %v1627_v8 }
0x1518   :  { %v1637_v11 = vpop.permute.xlu0 %1636 }
0x1519   :  { %2717 = vpow2.f32 %v1628_v9  ;;  %v1642_v12 = vsel %vm356_vm3, %v1637_v11, 0 }
0x151a   :  { %2580 = vmatpush3.bf16.msra.mxu0 %v1642_v12 }
0x151b   :  { %2591 = vmatprep.subr.bf16.mxu0 %v3046_v1 }
0x151c   :  { %v1734_v23 = vpop.permute.xlu0 %1733 }
0x1523   :  { %v2718_v13 = vpop.eup %2717 }
0x1524   :  { %v1630_v15 = vsel %vm284_vm2, %v2718_v13, 0.0 }
0x1525   :  { %1631 = vadd.xlane.f32.xlu1 %v1630_v15  ;;  %v2677_v15 = vld [vmem:[#allocation16 + $0x10] sm:$0xff]  }
0x1536   :  { %1735 = vrot.lane.b32.xlu1 %v3485_v51, %s3054_s10 }
0x15b2   :  { %v1632_v16 = vpop.xlane.xlu1 %1631 }
0x15b3   :  { %2719 = vrcp.f32 %v1632_v16  ;;  %v2678_v16 = vld [vmem:[#allocation16 + $0x18] sm:$0xff]  }
0x15b6   :  { %v1736_v20 = vpop.permute.xlu1 %1735 }
0x15b7   :  { %v1741_v22 = vsel %vm284_vm2, %v1736_v20, 0 }
0x15bd   :  { %v2720_v17 = vpop.eup %2719 }
0x15be   :  { %v1634_v19 = vmul.f32 %v2720_v17, %v2718_v13 }
0x15c0   :  { %v1635_v21 = vpack.c.bf16 %v1634_v19, %v1634_v19 }
0x15c2   :  { %2582 = vmatmul.mubr.msk.bf16.vlgmr.msra.gmra.mrb[44].mxu0 %vm284_vm2, %v1635_v21  ;;  %v2328_v21 = vld [vmem:[#allocation13 + $0x1] ss:$0 sm:$0xff] }
0x15c3   :  { %2592 = vmatpush3.bf16.xpose.msra.mxu0 %v1741_v22  ;;  %2593 = vmatprep.mubr.msk.bf16.mxu0 %vm3047_vm0, %v3046_v1 }
0x15c4   :  { %2603 = vmatprep.subr.bf16.mxu0 %v3046_v1 }
0x15ca   :  { %2594 = vmatmul.mubr.msk.bf16.vlgmr.msra.gmra.mrb[48].mxu0 %vm284_vm2, %v1734_v23  ;;  %v2329_v23 = vld [vmem:[#allocation14 + $0x1] ss:$0 sm:$0xff] }
0x15cb   :  { %2605 = vmatprep.mubr.msk.bf16.mxu0 %vm3047_vm0, %v3046_v1 }
0x1695   :  { %v1678_v27 = vpop.f32.mrb[44].mxu0 }
0x1696   :  { %v1685_v28 = vpack.c.bf16 %v1678_v27, %v1678_v27  ;;  %v2583_v29 = vpop.f32.mrb[45].mxu0  ;;  %v2679_v27 = vld [vmem:[%s3673_s11 + $0x20] sm:$0xff]  }
0x1697   :  { %v1681_v30 = vpop.f32.mrb[46].mxu0  ;;  %v2681_v29 = vld [vmem:[%s3673_s11 + $0x30] sm:$0xff]  }
0x1698   :  { %v2584_v31 = vpop.f32.mrb[47].mxu0  ;;  %2588 = vmatmul.mubr.msk.bf16.vlgmr.msra.gmra.mrb[48].mxu1 %vm284_vm2, %v1685_v28  ;;  %v2680_v28 = vld [vmem:[%s3673_s11 + $0x28] sm:$0xff]   ;;  %v2682_v30 = vld [vmem:[%s3673_s11 + $0x38] sm:$0xff]  }
0x1699   :  { %2599 = vmatprep.mubr.msk.bf16.mxu1 %vm3047_vm0, %v3046_v1  ;;  %v2330_v31 = vld [vmem:[#allocation17 + $0x1] ss:$0 sm:$0xff] }
0x169d   :  { %v1777_v32 = vpop.f32.mrb[48].mxu0 }
0x169e   :  { %v1783_v33 = vmul.f32 0.35355338, %v1777_v32  ;;  %v2595_v34 = vpop.f32.mrb[49].mxu0 }
0x169f   :  { %v1780_v35 = vpop.f32.mrb[50].mxu0 }
0x16a0   :  { %v2596_v36 = vpop.f32.mrb[51].mxu0  ;;  %v1784_v37 = vadd.f32 %v3342_v18, %v1783_v33 }
0x16a2   :  { %v1785_v3 = vsel %vm284_vm2, %v1784_v37, -inf }
0x16a3   :  { %1786 = vmax.xlane.f32.xlu1 %v1785_v3 }
0x1730   :  { %v1787_v38 = vpop.xlane.xlu1 %1786 }
0x1731   :  { %v1788_v39 = vsub.f32 %v1784_v37, %v1787_v38 }
0x1733   :  { %v1789_v40 = vmul.f32 1.442695, %v1788_v39 }
0x1735   :  { %2721 = vpow2.f32 %v1789_v40 }
0x173f   :  { %v2722_v41 = vpop.eup %2721 }
0x1740   :  { %v1791_v42 = vsel %vm284_vm2, %v2722_v41, 0.0 }
0x1741   :  { %1792 = vadd.xlane.f32.xlu0 %v1791_v42 }
0x1757   :  { %1797 = vrot.lane.b32.xlu0 %v3485_v51, %s3057_s6  ;;  %v2314_v51 = vld [vmem:[%s3667_s5 + $0x38] sm:$0xff] }
0x1758   :  { %v1845_v55 = vpack.c.bf16 %v2314_v51, %v2314_v51 }
0x175a   :  { %v1851_v56 = vsel %vm356_vm3, %v1845_v55, 0 }
0x175b   :  { %2604 = vmatpush3.bf16.msra.mxu0 %v1851_v56 }
0x175c   :  { %2617 = vmatprep.subr.bf16.mxu0 %v3046_v1 }
0x176b   :  { %v1726_v43 = vpop.f32.mrb[48].mxu1 }
0x176c   :  { %v1732_v45 = vadd.f32 %v1726_v43, %v3549_v59  ;;  %v2589_v46 = vpop.f32.mrb[49].mxu1 }
0x176d   :  { %v1729_v47 = vpop.f32.mrb[50].mxu1 }
0x176e   :  { %v2590_v18 = vpop.f32.mrb[51].mxu1 }
0x17ce   :  { %v1793_v48 = vpop.xlane.xlu0 %1792 }
0x17cf   :  { %2723 = vrcp.f32 %v1793_v48 }
0x17d2   :  { %v1798_v49 = vpop.permute.xlu0 %1797 }
0x17d3   :  { %v1803_v50 = vsel %vm356_vm3, %v1798_v49, 0 }
0x17d4   :  { %2598 = vmatpush3.bf16.msra.mxu1 %v1803_v50 }
0x17d5   :  { %2609 = vmatprep.subr.bf16.mxu1 %v3046_v1 }
0x17d9   :  { %v2724_v52 = vpop.eup %2723 }
0x17da   :  { %v1795_v53 = vmul.f32 %v2724_v52, %v2722_v41 }
0x17dc   :  { %v1796_v54 = vpack.c.bf16 %v1795_v53, %v1795_v53 }
0x17de   :  { %2600 = vmatmul.mubr.msk.bf16.vlgmr.msra.gmra.mrb[52].mxu1 %vm284_vm2, %v1796_v54 }
0x17df   :  { %2613 = vmatprep.mubr.msk.bf16.mxu1 %vm3047_vm0, %v3046_v1  ;;  %2610 = vmatpush3.bf16.msra.mxu1 %v2677_v15 }
0x17e0   :  { %2611 = vmatprep.subr.bf16.mxu1 %v3046_v1 }
0x17e3   :  { %2612 = vmatpush3.bf16.msra.mxu1 %v2678_v16 }
0x17e4   :  { %2629 = vmatprep.subr.bf16.mxu1 %v3046_v1 }
0x18b1   :  { %v1839_v57 = vpop.f32.mrb[52].mxu1 }
0x18b2   :  { %v1846_v58 = vpack.c.bf16 %v1839_v57, %v1839_v57  ;;  %v2601_v59 = vpop.f32.mrb[53].mxu1 }
0x18b3   :  { %v1842_v60 = vpop.f32.mrb[54].mxu1 }
0x18b4   :  { %v2602_v61 = vpop.f32.mrb[55].mxu1  ;;  %2606 = vmatmul.mubr.msk.bf16.vlgmr.msra.gmra.mrb[52].mxu0 %vm284_vm2, %v1846_v58 }
0x18b5   :  { %2625 = vmatprep.mubr.msk.bf16.mxu0 %vm3047_vm0, %v3046_v1  ;;  %2618 = vmatpush3.bf16.msra.mxu0 %v2679_v27 }
0x18b6   :  { %2619 = vmatprep.subr.bf16.mxu0 %v3046_v1 }
0x18b9   :  { %2620 = vmatpush3.bf16.msra.mxu0 %v2680_v28 }
0x18ba   :  { %2621 = vmatprep.subr.bf16.mxu0 %v3046_v1 }
0x18bd   :  { %2622 = vmatpush3.bf16.msra.mxu0 %v2681_v29 }
0x18be   :  { %2623 = vmatprep.subr.bf16.mxu0 %v3046_v1 }
0x18c1   :  { %2624 = vmatpush3.bf16.msra.mxu0 %v2682_v30 }
0x1987   :  { %v1887_v62 = vpop.f32.mrb[52].mxu0 }
0x1988   :  { %v1893_v0 = vadd.f32 %v1887_v62, %v1732_v45  ;;  %v2607_v2 = vpop.f32.mrb[53].mxu0  ;;  %v2342_v62 = vld [vmem:[#allocation19 + $0x1] ss:$0 sm:$0xff] }
0x1989   :  { %v1890_v4 = vpop.f32.mrb[54].mxu0 }
0x198a   :  { %v1902_v5 = vadd.f32 %v2327_v63, %v1893_v0  ;;  %v2608_v6 = vpop.f32.mrb[55].mxu0 }
0x198c   :  { %v1903_v10 = vadd.f32 %v1902_v5, %v3478_v44 }
0x198e   :  { %v1908_v7 = vsel %vm232_vm1, %v1903_v10, 0.0 }
0x198f   :  { %1909 = vadd.xlane.f32.xlu1 %v1908_v7 }
0x1a1c   :  { %v1910_v8 = vpop.xlane.xlu1 %1909 }
0x1a1d   :  { %v1911_v9 = vmul.f32 0.03125, %v1910_v8 }
0x1a1f   :  { %v1912_v11 = vsub.f32 %v1903_v10, %v1911_v9 }
0x1a21   :  { %v1913_v12 = vmul.f32 %v1912_v11, %v1912_v11 }
0x1a23   :  { %v1914_v13 = vsel %vm232_vm1, %v1913_v12, 0.0  ;;  %v2683_v12 = vld [vmem:[%s3677_s15] sm:$0xff]  }
0x1a24   :  { %1915 = vadd.xlane.f32.xlu1 %v1914_v13  ;;  %v2684_v13 = vld [vmem:[%s3677_s15 + $0x8] sm:$0xff]  }
0x1ab1   :  { %v1916_v17 = vpop.xlane.xlu1 %1915 }
0x1ab2   :  { %v1917_v44 = vmul.f32 0.03125, %v1916_v17 }
0x1ab4   :  { %v1918_v19 = vadd.f32 1e-05, %v1917_v44 }
0x1ab6   :  { %2725 = vrsqrt.f32 %v1918_v19  ;;  %v2349_v19 = vld [vmem:[#allocation20 + $0x1] ss:$0 sm:$0xff] }
0x1ac0   :  { %v2726_v20 = vpop.eup %2725 }
0x1ac1   :  { %v1920_v22 = vmul.f32 %v2726_v20, %v1912_v11 }
0x1ac3   :  { %v1927_v24 = vmul.f32 %v2328_v21, %v1920_v22  ;;  %v2350_v21 = vld [vmem:[%s3676_s14 + $0x1] ss:$0 sm:$0xff]  ;;  %s2231_s14 = scalar_lea.vmem [#allocation2], %s2355_s24 }
0x1ac5   :  { %v1934_v25 = vadd.f32 %v2329_v23, %v1927_v24 }
0x1ac7   :  { %v1935_v26 = vpack.c.bf16 %v1934_v25, %v1934_v25 }
0x1ac9   :  { %2614 = vmatmul.mubr.msk.bf16.vlgmr.msra.gmra.mrb[56].mxu1 %vm232_vm1, %v1935_v26 }
0x1aca   :  { %2633 = vmatprep.mubr.msk.bf16.mxu1 %vm3047_vm0, %v3046_v1  ;;  %2630 = vmatpush3.bf16.msra.mxu1 %v2683_v12 }
0x1acb   :  { %2631 = vmatprep.subr.bf16.mxu1 %v3046_v1  ;;  %v2351_v1 = vld [vmem:[%s3678_s16] ss:$0 sm:$0xff]  ;;  %s3059_s16 = smov [#allocation23]  }
0x1acc   :  { %s2250_s26 = sshll.u32 %s3059_s16, 4  ;;  %s2251_s26 = int_to_ptr.vmem [resolvable:$true] %s2250_s26 }
0x1acd   :  { %s2969_s18 = scalar_lea.vmem %s2251_s26, 32  ;;  %p2974_p2 = scmp.lt.s32.totalorder %s2251_s26, %s2251_s26 }
0x1ace   :  { %2632 = vmatpush3.bf16.msra.mxu1 %v2684_v13  ;;  %p2970_p1 = scmp.ne.s32.totalorder %s2251_s26, %s2969_s18  ;;  %p2975_p3 = scmp.lt.s32.totalorder %s2969_s18, %s2969_s18 }
0x1ad0   :  { %p2976_p4 = por %p2975_p3, %p2974_p2 }
0x1ad2   :  { %p2977_p5 = pnand %p2976_p4, %p2970_p1 }
0x1b9c   :  { %v1998_v32 = vpop.f32.mrb[56].mxu1 }
0x1b9d   :  { %v1999_v33 = vadd.f32 %v2330_v31, %v1998_v32  ;;  %v2615_v34 = vpop.f32.mrb[57].mxu1 }
0x1b9e   :  { %v2001_v35 = vpop.f32.mrb[58].mxu1 }
0x1b9f   :  { %v2005_v36 = vmul.f32 0.70710677, %v1999_v33  ;;  %v2616_v37 = vpop.f32.mrb[59].mxu1  ;;  %v2004_v58 = vmul.f32 0.5, %v1999_v33 }
0x1ba1   :  { %v2008_v3 = vand.u32 2147483647, %v2005_v36  ;;  %vm2006_vm6 = vcmp.ge.f32.partialorder %v2005_v36, 0.0 }
0x1ba2   :  { %v2007_v56 = vsel %vm2006_vm6, 1.0, %v3058_v14 }
0x1ba3   :  { %v2009_v38 = vmul.f32 0.3275911, %v2008_v3  ;;  %v2022_v40 = vsub.f32 0.0, %v2008_v3 }
0x1ba5   :  { %v2010_v39 = vadd.f32 1.0, %v2009_v38  ;;  %v2023_v42 = vmul.f32 %v2022_v40, %v2008_v3 }
0x1ba7   :  { %2727 = vrcp.f32 %v2010_v39  ;;  %v2024_v46 = vmul.f32 1.442695, %v2023_v42 }
0x1ba9   :  { %2729 = vpow2.f32 %v2024_v46 }
0x1bb1   :  { %v2728_v41 = vpop.eup %2727 }
0x1bb2   :  { %v2013_v43 = vmul.f32 1.0614054, %v2728_v41 }
0x1bb3   :  { %v2730_v54 = vpop.eup %2729 }
0x1bb4   :  { %v2014_v45 = vadd.f32 -1.4531521, %v2013_v43 }
0x1bb6   :  { %v2015_v47 = vmul.f32 %v2728_v41, %v2014_v45 }
0x1bb8   :  { %v2016_v18 = vadd.f32 1.4214138, %v2015_v47 }
0x1bba   :  { %v2017_v48 = vmul.f32 %v2728_v41, %v2016_v18 }
0x1bbc   :  { %v2018_v49 = vadd.f32 -0.28449672, %v2017_v48 }
0x1bbe   :  { %v2019_v50 = vmul.f32 %v2728_v41, %v2018_v49 }
0x1bc0   :  { %v2020_v52 = vadd.f32 0.2548296, %v2019_v50 }
0x1bc2   :  { %v2021_v53 = vmul.f32 %v2728_v41, %v2020_v52 }
0x1bc4   :  { %v2026_v51 = vmul.f32 %v2730_v54, %v2021_v53 }
0x1bc6   :  { %v2027_v55 = vsub.f32 1.0, %v2026_v51 }
0x1bc8   :  { %v2028_v57 = vmul.f32 %v2027_v55, %v2007_v56 }
0x1bca   :  { %v2029_v59 = vadd.f32 1.0, %v2028_v57 }
0x1bcc   :  { %v2030_v60 = vmul.f32 %v2029_v59, %v2004_v58 }
0x1bce   :  { %v2031_v61 = vpack.c.bf16 %v2030_v60, %v2030_v60 }
0x1bd0   :  { %2626 = vmatmul.mubr.msk.bf16.vlgmr.msra.gmra.mrb[56].mxu0 %vm1104_vm5, %v2031_v61 }
0x1ca3   :  { %v2110_v63 = vpop.f32.mrb[56].mxu0 }
0x1ca4   :  { %v2111_v0 = vadd.f32 %v2342_v62, %v2110_v63  ;;  %v2627_v2 = vpop.f32.mrb[57].mxu0 }
0x1ca5   :  { %v2113_v4 = vpop.f32.mrb[58].mxu0 }
0x1ca6   :  { %v2628_v5 = vpop.f32.mrb[59].mxu0  ;;  %v2116_v6 = vadd.f32 %v2111_v0, %v1934_v25 }
0x1ca8   :  { %v2121_v10 = vsel %vm232_vm1, %v2116_v6, 0.0 }
0x1ca9   :  { %2122 = vadd.xlane.f32.xlu1 %v2121_v10 }
0x1d36   :  { %v2123_v7 = vpop.xlane.xlu1 %2122 }
0x1d37   :  { %v2124_v8 = vmul.f32 0.03125, %v2123_v7 }
0x1d39   :  { %v2125_v14 = vsub.f32 %v2116_v6, %v2124_v8 }
0x1d3b   :  { %v2126_v9 = vmul.f32 %v2125_v14, %v2125_v14 }
0x1d3d   :  { %v2127_v11 = vsel %vm232_vm1, %v2126_v9, 0.0 }
0x1d3e   :  { %2128 = vadd.xlane.f32.xlu1 %v2127_v11 }
0x1dcb   :  { %v2129_v15 = vpop.xlane.xlu1 %2128 }
0x1dcc   :  { %v2130_v16 = vmul.f32 0.03125, %v2129_v15 }
0x1dce   :  { %v2131_v17 = vadd.f32 1e-05, %v2130_v16 }
0x1dd0   :  { %2731 = vrsqrt.f32 %v2131_v17 }
0x1dda   :  { %v2732_v44 = vpop.eup %2731 }
0x1ddb   :  { %v2133_v20 = vmul.f32 %v2732_v44, %v2125_v14 }
0x1ddd   :  { %v2140_v22 = vmul.f32 %v2349_v19, %v2133_v20 }
0x1ddf   :  { %v2147_v23 = vadd.f32 %v2350_v21, %v2140_v22 }
0x1de1   :  { %v2148_v24 = vpack.c.bf16 %v2147_v23, %v2147_v23 }
0x1de3   :  { %2634 = vmatmul.mubr.msk.bf16.vlgmr.msra.gmra.mrb[60].mxu1 %vm232_vm1, %v2148_v24 }
0x1eb6   :  { %v2209_v25 = vpop.f32.mrb[60].mxu1 }
0x1eb7   :  { %v2210_v26 = vadd.f32 %v2351_v1, %v2209_v25  ;;  %v2635_v27 = vpop.f32.mrb[61].mxu1 }
0x1eb8   :  { %v2212_v28 = vpop.f32.mrb[62].mxu1 }
0x1eb9   :  { %2215 = vst [vmem:[#allocation2] sm:$0xff] %v2210_v26  ;;  %2216 = vmax.xlane.f32.xlu1 %v2210_v26  ;;  %v2636_v29 = vpop.f32.mrb[63].mxu1 }
0x1ec0   :  { %v2228_v30 = vld [vmem:[%s2227_s29] sm:$0x1] }
0x1ec1   :  { %v2232_v31 = vld [vmem:[%s2231_s14] sm:$0x1]  ;;  %2229 = vst [vmem:[#allocation23] sm:$0x1] %v2228_v30 }
0x1ec2   :  { %2233 = vst [vmem:[#allocation23 + $0x1] sm:$0x1] %v2232_v31 }
0x1f46   :  { %v2217_v32 = vpop.xlane.xlu1 %2216 }
0x1f47   :  { %v2218_v33 = vsub.f32 %v2210_v26, %v2217_v32 }
0x1f49   :  { %v2219_v34 = vmul.f32 1.442695, %v2218_v33 }
0x1f4b   :  { %2733 = vpow2.f32 %v2219_v34 }
0x1f55   :  { %v2734_v35 = vpop.eup %2733 }
0x1f56   :  { %2221 = vadd.xlane.f32.xlu1 %v2734_v35 }
0x1f57   :  { %2980 = shalt.err (!%p2977_p5)
}
0x1f58   :  { %s3693_s23 = sld [smem:[#allocation38_spill]] }
0x1f5e   :  { %s2981_s25 = scalar_lea.hbm %s3693_s23, 32 }
0x1f5f   :  { %p2982_p6 = scmp.ne.s32.totalorder %s3693_s23, %s2981_s25  ;;  %p2985_p7 = scmp.lt.u32.totalorder %s2981_s25, %s3693_s23 }
0x1f61   :  { %p2987_p8 = pnand %p2985_p7, %p2982_p6 }
0x1f63   :  { %2990 = shalt.err (!%p2987_p8)
}
0x1f64   :  { %2253 = dma.vmem_to_hbm [thread:$0]  %s2251_s26, 32, %s3693_s23, [#allocation24]  }
0x1f65   :  { %s3060_s2 = smov [#allocation22]  }
0x1f66   :  { %s2240_s8 = sshll.u32 %s3060_s2, 4  ;;  %s2241_s8 = int_to_ptr.vmem [resolvable:$true] %s2240_s8 }
0x1f67   :  { %s2991_s6 = scalar_lea.vmem %s2241_s8, 128  ;;  %p2996_p10 = scmp.lt.s32.totalorder %s2241_s8, %s2241_s8 }
0x1f68   :  { %p2992_p9 = scmp.ne.s32.totalorder %s2241_s8, %s2991_s6  ;;  %p2997_p11 = scmp.lt.s32.totalorder %s2991_s6, %s2991_s6 }
0x1f6a   :  { %p2998_p12 = por %p2997_p11, %p2996_p10 }
0x1f6c   :  { %p2999_p13 = pnand %p2998_p12, %p2992_p9 }
0x1fe3   :  { %v2222_v36 = vpop.xlane.xlu1 %2221 }
0x1fe4   :  { %2735 = vrcp.f32 %v2222_v36 }
0x1fee   :  { %v2736_v37 = vpop.eup %2735 }
0x1fef   :  { %v2224_v3 = vmul.f32 %v2736_v37, %v2734_v35 }
0x1ff1   :  { %2225 = vst [vmem:[#allocation22] sm:$0xff] %v2224_v3 }
0x1ff2   :  { %3002 = shalt.err (!%p2999_p13)
}
0x1ff3   :  { %s3694_s4 = sld [smem:[#allocation37_spill]] }
0x1ff9   :  { %s3003_s11 = scalar_lea.hbm %s3694_s4, 128 }
0x1ffa   :  { %p3004_p0 = scmp.ne.s32.totalorder %s3694_s4, %s3003_s11  ;;  %p3007_p1 = scmp.lt.u32.totalorder %s3003_s11, %s3694_s4 }
0x1ffc   :  { %p3009_p2 = pnand %p3007_p1, %p3004_p0 }
0x1ffe   :  { %3012 = shalt.err (!%p3009_p2)
}
0x1fff   :  { %2243 = dma.vmem_to_hbm [thread:$0]  %s2241_s8, 128, %s3694_s4, [#allocation5]  }
0x2000   :  { %3027 = dma.done.wait [#allocation5], 128  }
0x2001   :  { %3028 = vsyncadd [#allocation5], 4294967168 }
0x2002   :  { %3029 = dma.done.wait [#allocation24], 32  }
0x2003   :  { %3030 = vsyncadd [#allocation24], 4294967264 }
0x2004   :  { %2260 = vsyncpa [#allocation4], 1 }
0x2005   :  { %2261 = vsyncpa [#allocation9], 1 }
0x2006   :  { %2262 = vsyncpa [#allocation12], 1 }
0x2007   :  { %2263 = vsyncpa [#allocation15], 1 }
0x2008   :  { %2264 = vsyncpa [#allocation18], 1 }
0x2009   :  { %2265 = vsyncpa [#allocation21], 1 }
0x200a   :  { %2266 = vsyncpa [#allocation5], 1 }
0x200b   :  { %2267 = vsyncpa [#allocation24], 1 }
0x200c   :  { %2268 = vsyncpa [#allocation6], 1 }

</bundles_post_ra>
